<compile_context>
chip_gen: v7x
topology: tpu7x:2x2x1
jax: 0.10.0
libtpu: 0.0.40
codegen_flags: <defaults>
</compile_context>

<pallas_src>
import functools

import jax
import jax.numpy as jnp
from jax import lax
from jax.experimental import pallas as pl
from jax.experimental.pallas import tpu as pltpu

NEG_SLOPE = 0.01  # nn.LeakyReLU default


# ---------------------------------------------------------------------------
# Fused kernel: conv1(3x3,s) + LReLU + conv2(3x3) + GDN + skip(1x1,s), one tile
# ---------------------------------------------------------------------------
def _fused_block_kernel(cols_ref, w1_ref, b1_ref, w2_ref, b2_ref,
                        gT_ref, beta_ref, wsk_ref, bsk_ref,
                        o_ref, y1_ref, *, TH, Wp, Wo, Ho):
    """One (batch, row-tile) grid step.

    cols_ref : (1, 1, M1, K) bf16  im2col of x in y1-space, M1 = (TH+2)*Wp
    w1_ref   : (K, Cp)       bf16  conv1 weight, K = 9*Cin
    w2_ref   : (9, Cp, Cp)   bf16  conv2 weight per tap
    gT_ref   : (Cp, Cp)      bf16  GDN gamma^T
    wsk_ref  : (K, Cp)       bf16  skip 1x1 weight embedded at centre-tap rows
    o_ref    : (1, 1, L, Cp) f32   L = TH*Wp (junk cols >= Wo dropped in wrapper)
    y1_ref   : (M1 + 8, Cp)  bf16  scratch: y1 + zero halo, flat over padded width
    """
    Cp = o_ref.shape[-1]
    THh = TH + 2
    M1 = THh * Wp
    L = TH * Wp
    cdt = jnp.bfloat16
    t = pl.program_id(1)

    # ---- conv1: ONE matmul (K = 9*Cin) + bias + LeakyReLU (f32) ---------------
    cols = cols_ref[0, 0]                                           # (M1, K) bf16
    y1 = jnp.dot(cols, w1_ref[...], preferred_element_type=jnp.float32)
    y1 = y1 + b1_ref[...]
    y1 = jnp.where(y1 > 0, y1, NEG_SLOPE * y1)

    # ---- zero rows/cols outside the image: this IS conv2's zero padding -------
    row = lax.broadcasted_iota(jnp.int32, (THh, Wp, 1), 0)
    col = lax.broadcasted_iota(jnp.int32, (THh, Wp, 1), 1)
    arow = t * TH - 1 + row                                          # absolute y1 row
    valid = (arow >= 0) & (arow < Ho) & (col >= 1) & (col <= Wo)
    y1 = jnp.where(valid, y1.reshape(THh, Wp, Cp), 0.0)              # Wp % 8 == 0: free
    y1_ref[0:M1, :] = y1.astype(cdt).reshape(M1, Cp)                 # single bf16 store
    y1_ref[M1:, :] = jnp.zeros((y1_ref.shape[0] - M1, Cp), cdt)      # window over-read pad

    # ---- conv2 (3x3, s=1): nine contiguous flat windows, MXU-accumulated ------
    acc = jnp.zeros((L, Cp), jnp.float32)
    for dh in range(3):
        for dw in range(3):
            off = dh * Wp + dw
            win = y1_ref[off:off + L, :]                             # (L, Cp) bf16
            acc = acc + jnp.dot(win, w2_ref[dh * 3 + dw],
                                preferred_element_type=jnp.float32)
    y2 = acc + b2_ref[...]

    # ---- GDN: y2 * rsqrt(y2^2 @ gamma^T + beta) -------------------------------
    sq = (y2 * y2).astype(cdt)
    norm = jnp.dot(sq, gT_ref[...], preferred_element_type=jnp.float32)
    norm = jnp.maximum(norm + beta_ref[...], 1e-6)    # free clamp; guards rsqrt
    y = y2 * lax.rsqrt(norm)

    # ---- skip: 1x1 strided conv = centre-tap rows of the same im2col ----------
    xc = cols_ref[0, 0, Wp + 1:Wp + 1 + L, :]          # aligned with y2's flat rows
    idt = jnp.dot(xc, wsk_ref[...], preferred_element_type=jnp.float32)
    o_ref[0, 0] = y + idt + bsk_ref[...]


# ---------------------------------------------------------------------------
# One-time parameter preparation (flatten, channel padding, bf16 casts)
# ---------------------------------------------------------------------------
def prepare_params(params, lane=128):
    w1, b1 = params["w1"], params["b1"]
    w2, b2 = params["w2"], params["b2"]
    gamma, beta = params["gamma"], params["beta"]
    wsk, bsk = params["wsk"], params["bsk"]
    Cin, Cout = int(w1.shape[2]), int(w1.shape[3])
    Cp = -(-Cout // lane) * lane
    pc = Cp - Cout
    K = 9 * Cin

    w1p = jnp.pad(w1.reshape(K, Cout), ((0, 0), (0, pc)))
    w2p = jnp.pad(w2.reshape(9, Cout, Cout), ((0, 0), (0, pc), (0, pc)))
    gTp = jnp.pad(gamma.T, ((0, pc), (0, pc)))
    # skip 1x1 weight embedded at the centre-tap (dh=dw=1) rows of a (K, Cp) matrix
    wske = jnp.zeros((K, Cp), jnp.float32).at[4 * Cin:5 * Cin, :Cout].set(wsk)

    return {
        "Cin": Cin, "Cout": Cout, "Cp": Cp,
        "w1": w1p.astype(jnp.bfloat16),
        "b1": jnp.pad(b1, (0, pc)).reshape(1, Cp).astype(jnp.float32),
        "w2": w2p.astype(jnp.bfloat16),
        "b2": jnp.pad(b2, (0, pc)).reshape(1, Cp).astype(jnp.float32),
        "gT": gTp.astype(jnp.bfloat16),
        # padded GDN beta = 1 so rsqrt stays finite in the (discarded) pad channels
        "beta": jnp.pad(beta, (0, pc),
                        constant_values=1.0).reshape(1, Cp).astype(jnp.float32),
        "wsk": wske.astype(jnp.bfloat16),
        "bsk": jnp.pad(bsk, (0, pc)).reshape(1, Cp).astype(jnp.float32),
    }


def _choose_tile_rows(Ho, Wo, Wp, K, Cp, tile_rows):
    if tile_rows is not None:
        return max(1, min(int(tile_rows), Ho))
    TH = min(Ho, max(8, -(-256 // Wo)))        # aim for M = TH*Wo >= 256 (v6e/v7x MXU)
    Kp = -(-K // 128) * 128                    # lane-padded K footprint in VMEM

    def ws(th):                                # per-step VMEM working set
        thh, m1 = th + 2, (th + 2) * Wp
        return (2 * thh * Wp * Kp * 2          # cols tile (bf16, double-buffered)
                + (m1 + 8) * Cp * 2            # y1 scratch (bf16)
                + 2 * th * Wp * Cp * 4)        # out tile (f32, double-buffered)

    while TH > 4 and ws(TH) > 16 * 1024 * 1024:   # sized against v7x's 64 MiB VMEM
        TH = max(4, TH // 2)
    return TH


# ---------------------------------------------------------------------------
# Forward wrapper (NCHW in / NCHW out)
# ---------------------------------------------------------------------------
def residual_block_with_stride(x_nchw, prep, stride=2, tile_rows=None):
    Cin, Cout, Cp = prep["Cin"], prep["Cout"], prep["Cp"]
    K = 9 * Cin
    x = jnp.transpose(x_nchw, (0, 2, 3, 1)).astype(jnp.float32)      # NCHW -> NHWC
    B, H, W, _ = x.shape
    Ho = (H + 2 - 3) // stride + 1
    Wo = (W + 2 - 3) // stride + 1
    Wp = -(-(Wo + 2) // 8) * 8          # conv2-padded width, rounded to sublane mult.

    # output-space im2col: conv1 becomes one matmul with K = 9*Cin (lane-dense for
    # the Cin << 128 stem case); its centre tap is exactly the skip-conv input.
    xp = jnp.pad(x, ((0, 0), (1, 1), (1, 1), (0, 0)))
    taps = [xp[:, dh:dh + stride * (Ho - 1) + 1:stride,
               dw:dw + stride * (Wo - 1) + 1:stride, :]
            for dh in range(3) for dw in range(3)]
    cols = jnp.concatenate(taps, axis=-1).astype(jnp.bfloat16)       # (B,Ho,Wo,K)

    TH = _choose_tile_rows(Ho, Wo, Wp, K, Cp, tile_rows)
    THh = TH + 2
    nT = -(-Ho // TH)
    Ho_pad = nT * TH
    M1, L = THh * Wp, TH * Wp

    # overlapping (1-row-halo) row tiles over a zero-extended y1 grid, built once
    # in the wrapper; halo y1 rows are recomputed by conv1 inside each tile.
    cols_p = jnp.pad(cols, ((0, 0), (1, Ho_pad - Ho + 1), (1, Wp - Wo - 1), (0, 0)))
    row_idx = jnp.arange(nT)[:, None] * TH + jnp.arange(THh)[None, :]
    tiles = jnp.take(cols_p, row_idx, axis=1)                        # (B,nT,THh,Wp,K)
    tiles = tiles.reshape(B, nT, M1, K)

    kern = functools.partial(_fused_block_kernel, TH=TH, Wp=Wp, Wo=Wo, Ho=Ho)
    out = pl.pallas_call(
        kern,
        out_shape=jax.ShapeDtypeStruct((B, nT, L, Cp), jnp.float32),
        grid_spec=pltpu.PrefetchScalarGridSpec(
            num_scalar_prefetch=0,
            grid=(B, nT),
            in_specs=[
                pl.BlockSpec((1, 1, M1, K), lambda b, t: (b, t, 0, 0)),   # im2col tile
                pl.BlockSpec((K, Cp), lambda b, t: (0, 0)),               # W1
                pl.BlockSpec((1, Cp), lambda b, t: (0, 0)),               # b1
                pl.BlockSpec((9, Cp, Cp), lambda b, t: (0, 0, 0)),        # W2
                pl.BlockSpec((1, Cp), lambda b, t: (0, 0)),               # b2
                pl.BlockSpec((Cp, Cp), lambda b, t: (0, 0)),              # gamma^T
                pl.BlockSpec((1, Cp), lambda b, t: (0, 0)),               # beta
                pl.BlockSpec((K, Cp), lambda b, t: (0, 0)),               # Wskip (embedded)
                pl.BlockSpec((1, Cp), lambda b, t: (0, 0)),               # bskip
            ],
            out_specs=pl.BlockSpec((1, 1, L, Cp), lambda b, t: (b, t, 0, 0)),
            scratch_shapes=[pltpu.VMEM((M1 + 8, Cp), jnp.bfloat16)],
        ),
        compiler_params=pltpu.CompilerParams(
            dimension_semantics=("parallel", "parallel"),
            vmem_limit_bytes=48 * 1024 * 1024),
    )(tiles, prep["w1"], prep["b1"], prep["w2"], prep["b2"],
      prep["gT"], prep["beta"], prep["wsk"], prep["bsk"])

    # drop junk width columns / lane padding / row padding; back to NCHW.
    out = out.reshape(B, nT, TH, Wp, Cp)[:, :, :, :Wo, :Cout]
    out = out.reshape(B, Ho_pad, Wo, Cout)[:, :Ho]
    # TODO(synk): consumers that accept NHWC (+ bf16) could skip this final pass.
    return jnp.transpose(out, (0, 3, 1, 2))


# ---------------------------------------------------------------------------
# Pure-JAX reference (same bf16 MXU-operand quantization, f32 elementwise)
# ---------------------------------------------------------------------------
def _reference(x_nchw, params, stride=2):
    cdt = jnp.bfloat16
    x = jnp.transpose(x_nchw, (0, 2, 3, 1)).astype(jnp.float32)
    dn = ("NHWC", "HWIO", "NHWC")
    y = lax.conv_general_dilated(x.astype(cdt), params["w1"].astype(cdt),
                                 (stride, stride), ((1, 1), (1, 1)),
                                 dimension_numbers=dn,
                                 preferred_element_type=jnp.float32)
    y = y + params["b1"]
    y = jnp.where(y > 0, y, NEG_SLOPE * y)
    y = lax.conv_general_dilated(y.astype(cdt), params["w2"].astype(cdt),
                                 (1, 1), ((1, 1), (1, 1)),
                                 dimension_numbers=dn,
                                 preferred_element_type=jnp.float32)
    y = y + params["b2"]
    norm = jnp.einsum("bhwk,ck->bhwc", (y * y).astype(cdt),
                      params["gamma"].astype(cdt),
                      preferred_element_type=jnp.float32) + params["beta"]
    y = y * lax.rsqrt(norm)
    idt = lax.conv_general_dilated(x.astype(cdt),
                                   params["wsk"][None, None].astype(cdt),
                                   (stride, stride), ((0, 0), (0, 0)),
                                   dimension_numbers=dn,
                                   preferred_element_type=jnp.float32)
    idt = idt + params["bsk"]
    return jnp.transpose(y + idt, (0, 3, 1, 2))


# ---------------------------------------------------------------------------
def make_params(in_ch, out_ch, key):
    k1, k2, k3, k4, k5, k6 = jax.random.split(key, 6)
    scale1 = 1.0 / jnp.sqrt(9.0 * in_ch)
    scale2 = 1.0 / jnp.sqrt(9.0 * out_ch)
    scalek = 1.0 / jnp.sqrt(1.0 * in_ch)
    return {
        # conv weights in HWIO layout (3,3,Cin,Cout)
        "w1": jax.random.normal(k1, (3, 3, in_ch, out_ch), jnp.float32) * scale1,
        "b1": jax.random.normal(k2, (out_ch,), jnp.float32) * scale1,
        "w2": jax.random.normal(k3, (3, 3, out_ch, out_ch), jnp.float32) * scale2,
        "b2": jax.random.normal(k4, (out_ch,), jnp.float32) * scale2,
        # GDN init (compressai defaults): gamma = 0.1*I, beta = 1
        "gamma": 0.1 * jnp.eye(out_ch, dtype=jnp.float32),
        "beta": jnp.ones((out_ch,), jnp.float32),
        # skip conv1x1
        "wsk": jax.random.normal(k5, (in_ch, out_ch), jnp.float32) * scalek,
        "bsk": jax.random.normal(k6, (out_ch,), jnp.float32) * scalek,
    }


if __name__ == "__main__":
    B, Cin, H, W = 2, 4, 16, 16
    Cout, stride = 8, 2

    x = jax.random.normal(jax.random.PRNGKey(0), (B, Cin, H, W), jnp.float32)
    params = make_params(Cin, Cout, jax.random.PRNGKey(42))
    prep = prepare_params(params)
    ref = _reference(x, params, stride)

    # exercise both the single-tile path and the multi-row-tile (halo) path
    for tr in (None, 4):
        fwd = jax.jit(functools.partial(residual_block_with_stride,
                                        prep=prep, stride=stride, tile_rows=tr))
        out = jax.block_until_ready(fwd(x))
        assert out.shape == (B, Cout, H // stride, W // stride), out.shape
        err = float(jnp.max(jnp.abs(out - ref)))
        assert err < 2e-2, (tr, err)
    print("KERNEL_OK")
</pallas_src>

<mosaic_0001>
module attributes {stable_mosaic.version = 11 : i64} {
  func.func @_fused_block_kernel(%arg0: i32, %arg1: i32, %arg2: memref<1x1x160x36xbf16, #tpu.memory_space<vmem>>, %arg3: memref<36x128xbf16, #tpu.memory_space<vmem>>, %arg4: memref<1x128xf32, #tpu.memory_space<vmem>>, %arg5: memref<9x128x128xbf16, #tpu.memory_space<vmem>>, %arg6: memref<1x128xf32, #tpu.memory_space<vmem>>, %arg7: memref<128x128xbf16, #tpu.memory_space<vmem>>, %arg8: memref<1x128xf32, #tpu.memory_space<vmem>>, %arg9: memref<36x128xbf16, #tpu.memory_space<vmem>>, %arg10: memref<1x128xf32, #tpu.memory_space<vmem>>, %arg11: memref<1x1x128x128xf32, #tpu.memory_space<vmem>>, %arg12: memref<168x128xbf16, #tpu.memory_space<vmem>>) attributes {dimension_semantics = [#tpu.dimension_semantics<parallel>, #tpu.dimension_semantics<parallel>], iteration_bounds = array<i64: 2, 1>, scalar_prefetch = 0 : i64, scratch_operands = 1 : i64, tpu.core_type = #tpu.core_type<tc>, window_params = [{transform_indices = @transform_0, window_bounds = array<i64: 1, 1, 160, 36>}, {pipeline_mode = #tpu.pipeline_mode<synchronous>, transform_indices = @transform_1, window_bounds = array<i64: 36, 128>}, {pipeline_mode = #tpu.pipeline_mode<synchronous>, transform_indices = @transform_2, window_bounds = array<i64: 1, 128>}, {pipeline_mode = #tpu.pipeline_mode<synchronous>, transform_indices = @transform_3, window_bounds = array<i64: 9, 128, 128>}, {pipeline_mode = #tpu.pipeline_mode<synchronous>, transform_indices = @transform_4, window_bounds = array<i64: 1, 128>}, {pipeline_mode = #tpu.pipeline_mode<synchronous>, transform_indices = @transform_5, window_bounds = array<i64: 128, 128>}, {pipeline_mode = #tpu.pipeline_mode<synchronous>, transform_indices = @transform_6, window_bounds = array<i64: 1, 128>}, {pipeline_mode = #tpu.pipeline_mode<synchronous>, transform_indices = @transform_7, window_bounds = array<i64: 36, 128>}, {pipeline_mode = #tpu.pipeline_mode<synchronous>, transform_indices = @transform_8, window_bounds = array<i64: 1, 128>}, {transform_indices = @transform_9, window_bounds = array<i64: 1, 1, 128, 128>}]} {
    %c0 = arith.constant 0 : index
    %c0_0 = arith.constant 0 : index
    %c0_1 = arith.constant 0 : index
    %c0_2 = arith.constant 0 : index
    %0 = vector.load %arg2[%c0, %c0_0, %c0_1, %c0_2] : memref<1x1x160x36xbf16, #tpu.memory_space<vmem>>, vector<1x1x160x36xbf16>
    %1 = vector.shape_cast %0 : vector<1x1x160x36xbf16> to vector<160x36xbf16>
    %c0_3 = arith.constant 0 : index
    %c0_4 = arith.constant 0 : index
    %2 = vector.load %arg3[%c0_3, %c0_4] : memref<36x128xbf16, #tpu.memory_space<vmem>>, vector<36x128xbf16>
    %cst = arith.constant dense<0.000000e+00> : vector<160x128xf32>
    %3 = tpu.matmul %1, %2, %cst {dimension_numbers = #tpu.dot_dimension_numbers<[1], [0], [0], [1], [0, 0, 1, 1], [], []>} : vector<160x36xbf16>, vector<36x128xbf16>, vector<160x128xf32> -> vector<160x128xf32>
    %c0_5 = arith.constant 0 : index
    %c0_6 = arith.constant 0 : index
    %4 = vector.load %arg4[%c0_5, %c0_6] : memref<1x128xf32, #tpu.memory_space<vmem>>, vector<1x128xf32>
    %5 = vector.broadcast %4 : vector<1x128xf32> to vector<160x128xf32>
    %6 = arith.addf %3, %5 : vector<160x128xf32>
    %cst_7 = arith.constant 0.000000e+00 : f32
    %7 = vector.broadcast %cst_7 : f32 to vector<160x128xf32>
    %8 = arith.cmpf ogt, %6, %7 : vector<160x128xf32>
    %cst_8 = arith.constant 0.00999999977 : f32
    %9 = vector.broadcast %cst_8 : f32 to vector<160x128xf32>
    %10 = arith.mulf %9, %6 : vector<160x128xf32>
    %11 = arith.select %8, %6, %10 : vector<160x128xi1>, vector<160x128xf32>
    %12 = tpu.iota {dimensions = array<i32: 0>} : vector<10x16x1xi32>
    %13 = tpu.iota {dimensions = array<i32: 1>} : vector<10x16x1xi32>
    %c8_i32 = arith.constant 8 : i32
    %14 = arith.muli %arg1, %c8_i32 : i32
    %c1_i32 = arith.constant 1 : i32
    %15 = arith.subi %14, %c1_i32 : i32
    %16 = vector.broadcast %15 : i32 to vector<10x16x1xi32>
    %17 = arith.addi %16, %12 : vector<10x16x1xi32>
    %c0_i32 = arith.constant 0 : i32
    %18 = vector.broadcast %c0_i32 : i32 to vector<10x16x1xi32>
    %19 = arith.cmpi sge, %17, %18 : vector<10x16x1xi32>
    %c8_i32_9 = arith.constant 8 : i32
    %20 = vector.broadcast %c8_i32_9 : i32 to vector<10x16x1xi32>
    %21 = arith.cmpi slt, %17, %20 : vector<10x16x1xi32>
    %22 = arith.andi %19, %21 : vector<10x16x1xi1>
    %c1_i32_10 = arith.constant 1 : i32
    %23 = vector.broadcast %c1_i32_10 : i32 to vector<10x16x1xi32>
    %24 = arith.cmpi sge, %13, %23 : vector<10x16x1xi32>
    %25 = arith.andi %22, %24 : vector<10x16x1xi1>
    %c8_i32_11 = arith.constant 8 : i32
    %26 = vector.broadcast %c8_i32_11 : i32 to vector<10x16x1xi32>
    %27 = arith.cmpi sle, %13, %26 : vector<10x16x1xi32>
    %28 = arith.andi %25, %27 : vector<10x16x1xi1>
    %29 = vector.shape_cast %11 : vector<160x128xf32> to vector<10x16x128xf32>
    %cst_12 = arith.constant 0.000000e+00 : f32
    %30 = vector.shape_cast %28 : vector<10x16x1xi1> to vector<10x16x1xi1>
    %31 = vector.broadcast %30 : vector<10x16x1xi1> to vector<10x16x128xi1>
    %32 = vector.broadcast %cst_12 : f32 to vector<10x16x128xf32>
    %33 = arith.select %31, %29, %32 : vector<10x16x128xi1>, vector<10x16x128xf32>
    %34 = arith.truncf %33 : vector<10x16x128xf32> to vector<10x16x128xbf16>
    %35 = vector.shape_cast %34 : vector<10x16x128xbf16> to vector<160x128xbf16>
    %c0_13 = arith.constant 0 : index
    %c0_14 = arith.constant 0 : index
    %36 = vector.load %arg12[%c0_13, %c0_14] : memref<168x128xbf16, #tpu.memory_space<vmem>>, vector<160x128xbf16>
    tpu.vector_store %arg12[%c0_13, %c0_14], %35 {strides = array<i32>} : memref<168x128xbf16, #tpu.memory_space<vmem>>, vector<160x128xbf16>,
    %cst_15 = arith.constant 0.000000e+00 : bf16
    %37 = vector.broadcast %cst_15 : bf16 to vector<8x128xbf16>
    %c160 = arith.constant 160 : index
    %c0_16 = arith.constant 0 : index
    %38 = vector.load %arg12[%c160, %c0_16] : memref<168x128xbf16, #tpu.memory_space<vmem>>, vector<8x128xbf16>
    tpu.vector_store %arg12[%c160, %c0_16], %37 {strides = array<i32>} : memref<168x128xbf16, #tpu.memory_space<vmem>>, vector<8x128xbf16>,
    %cst_17 = arith.constant 0.000000e+00 : f32
    %39 = vector.broadcast %cst_17 : f32 to vector<128x128xf32>
    %c0_18 = arith.constant 0 : index
    %c0_19 = arith.constant 0 : index
    %40 = vector.load %arg12[%c0_18, %c0_19] : memref<168x128xbf16, #tpu.memory_space<vmem>>, vector<128x128xbf16>
    %c0_20 = arith.constant 0 : index
    %c0_21 = arith.constant 0 : index
    %c0_22 = arith.constant 0 : index
    %41 = vector.load %arg5[%c0_20, %c0_21, %c0_22] : memref<9x128x128xbf16, #tpu.memory_space<vmem>>, vector<1x128x128xbf16>
    %42 = vector.shape_cast %41 : vector<1x128x128xbf16> to vector<128x128xbf16>
    %cst_23 = arith.constant dense<0.000000e+00> : vector<128x128xf32>
    %43 = tpu.matmul %40, %42, %cst_23 {dimension_numbers = #tpu.dot_dimension_numbers<[1], [0], [0], [1], [0, 0, 1, 1], [], []>} : vector<128x128xbf16>, vector<128x128xbf16>, vector<128x128xf32> -> vector<128x128xf32>
    %44 = arith.addf %39, %43 : vector<128x128xf32>
    %c1 = arith.constant 1 : index
    %c0_24 = arith.constant 0 : index
    %45 = vector.load %arg12[%c1, %c0_24] : memref<168x128xbf16, #tpu.memory_space<vmem>>, vector<128x128xbf16>
    %c1_25 = arith.constant 1 : index
    %c0_26 = arith.constant 0 : index
    %c0_27 = arith.constant 0 : index
    %46 = vector.load %arg5[%c1_25, %c0_26, %c0_27] : memref<9x128x128xbf16, #tpu.memory_space<vmem>>, vector<1x128x128xbf16>
    %47 = vector.shape_cast %46 : vector<1x128x128xbf16> to vector<128x128xbf16>
    %cst_28 = arith.constant dense<0.000000e+00> : vector<128x128xf32>
    %48 = tpu.matmul %45, %47, %cst_28 {dimension_numbers = #tpu.dot_dimension_numbers<[1], [0], [0], [1], [0, 0, 1, 1], [], []>} : vector<128x128xbf16>, vector<128x128xbf16>, vector<128x128xf32> -> vector<128x128xf32>
    %49 = arith.addf %44, %48 : vector<128x128xf32>
    %c2 = arith.constant 2 : index
    %c0_29 = arith.constant 0 : index
    %50 = vector.load %arg12[%c2, %c0_29] : memref<168x128xbf16, #tpu.memory_space<vmem>>, vector<128x128xbf16>
    %c2_30 = arith.constant 2 : index
    %c0_31 = arith.constant 0 : index
    %c0_32 = arith.constant 0 : index
    %51 = vector.load %arg5[%c2_30, %c0_31, %c0_32] : memref<9x128x128xbf16, #tpu.memory_space<vmem>>, vector<1x128x128xbf16>
    %52 = vector.shape_cast %51 : vector<1x128x128xbf16> to vector<128x128xbf16>
    %cst_33 = arith.constant dense<0.000000e+00> : vector<128x128xf32>
    %53 = tpu.matmul %50, %52, %cst_33 {dimension_numbers = #tpu.dot_dimension_numbers<[1], [0], [0], [1], [0, 0, 1, 1], [], []>} : vector<128x128xbf16>, vector<128x128xbf16>, vector<128x128xf32> -> vector<128x128xf32>
    %54 = arith.addf %49, %53 : vector<128x128xf32>
    %c16 = arith.constant 16 : index
    %c0_34 = arith.constant 0 : index
    %55 = vector.load %arg12[%c16, %c0_34] : memref<168x128xbf16, #tpu.memory_space<vmem>>, vector<128x128xbf16>
    %c3 = arith.constant 3 : index
    %c0_35 = arith.constant 0 : index
    %c0_36 = arith.constant 0 : index
    %56 = vector.load %arg5[%c3, %c0_35, %c0_36] : memref<9x128x128xbf16, #tpu.memory_space<vmem>>, vector<1x128x128xbf16>
    %57 = vector.shape_cast %56 : vector<1x128x128xbf16> to vector<128x128xbf16>
    %cst_37 = arith.constant dense<0.000000e+00> : vector<128x128xf32>
    %58 = tpu.matmul %55, %57, %cst_37 {dimension_numbers = #tpu.dot_dimension_numbers<[1], [0], [0], [1], [0, 0, 1, 1], [], []>} : vector<128x128xbf16>, vector<128x128xbf16>, vector<128x128xf32> -> vector<128x128xf32>
    %59 = arith.addf %54, %58 : vector<128x128xf32>
    %c17 = arith.constant 17 : index
    %c0_38 = arith.constant 0 : index
    %60 = vector.load %arg12[%c17, %c0_38] : memref<168x128xbf16, #tpu.memory_space<vmem>>, vector<128x128xbf16>
    %c4 = arith.constant 4 : index
    %c0_39 = arith.constant 0 : index
    %c0_40 = arith.constant 0 : index
    %61 = vector.load %arg5[%c4, %c0_39, %c0_40] : memref<9x128x128xbf16, #tpu.memory_space<vmem>>, vector<1x128x128xbf16>
    %62 = vector.shape_cast %61 : vector<1x128x128xbf16> to vector<128x128xbf16>
    %cst_41 = arith.constant dense<0.000000e+00> : vector<128x128xf32>
    %63 = tpu.matmul %60, %62, %cst_41 {dimension_numbers = #tpu.dot_dimension_numbers<[1], [0], [0], [1], [0, 0, 1, 1], [], []>} : vector<128x128xbf16>, vector<128x128xbf16>, vector<128x128xf32> -> vector<128x128xf32>
    %64 = arith.addf %59, %63 : vector<128x128xf32>
    %c18 = arith.constant 18 : index
    %c0_42 = arith.constant 0 : index
    %65 = vector.load %arg12[%c18, %c0_42] : memref<168x128xbf16, #tpu.memory_space<vmem>>, vector<128x128xbf16>
    %c5 = arith.constant 5 : index
    %c0_43 = arith.constant 0 : index
    %c0_44 = arith.constant 0 : index
    %66 = vector.load %arg5[%c5, %c0_43, %c0_44] : memref<9x128x128xbf16, #tpu.memory_space<vmem>>, vector<1x128x128xbf16>
    %67 = vector.shape_cast %66 : vector<1x128x128xbf16> to vector<128x128xbf16>
    %cst_45 = arith.constant dense<0.000000e+00> : vector<128x128xf32>
    %68 = tpu.matmul %65, %67, %cst_45 {dimension_numbers = #tpu.dot_dimension_numbers<[1], [0], [0], [1], [0, 0, 1, 1], [], []>} : vector<128x128xbf16>, vector<128x128xbf16>, vector<128x128xf32> -> vector<128x128xf32>
    %69 = arith.addf %64, %68 : vector<128x128xf32>
    %c32 = arith.constant 32 : index
    %c0_46 = arith.constant 0 : index
    %70 = vector.load %arg12[%c32, %c0_46] : memref<168x128xbf16, #tpu.memory_space<vmem>>, vector<128x128xbf16>
    %c6 = arith.constant 6 : index
    %c0_47 = arith.constant 0 : index
    %c0_48 = arith.constant 0 : index
    %71 = vector.load %arg5[%c6, %c0_47, %c0_48] : memref<9x128x128xbf16, #tpu.memory_space<vmem>>, vector<1x128x128xbf16>
    %72 = vector.shape_cast %71 : vector<1x128x128xbf16> to vector<128x128xbf16>
    %cst_49 = arith.constant dense<0.000000e+00> : vector<128x128xf32>
    %73 = tpu.matmul %70, %72, %cst_49 {dimension_numbers = #tpu.dot_dimension_numbers<[1], [0], [0], [1], [0, 0, 1, 1], [], []>} : vector<128x128xbf16>, vector<128x128xbf16>, vector<128x128xf32> -> vector<128x128xf32>
    %74 = arith.addf %69, %73 : vector<128x128xf32>
    %c33 = arith.constant 33 : index
    %c0_50 = arith.constant 0 : index
    %75 = vector.load %arg12[%c33, %c0_50] : memref<168x128xbf16, #tpu.memory_space<vmem>>, vector<128x128xbf16>
    %c7 = arith.constant 7 : index
    %c0_51 = arith.constant 0 : index
    %c0_52 = arith.constant 0 : index
    %76 = vector.load %arg5[%c7, %c0_51, %c0_52] : memref<9x128x128xbf16, #tpu.memory_space<vmem>>, vector<1x128x128xbf16>
    %77 = vector.shape_cast %76 : vector<1x128x128xbf16> to vector<128x128xbf16>
    %cst_53 = arith.constant dense<0.000000e+00> : vector<128x128xf32>
    %78 = tpu.matmul %75, %77, %cst_53 {dimension_numbers = #tpu.dot_dimension_numbers<[1], [0], [0], [1], [0, 0, 1, 1], [], []>} : vector<128x128xbf16>, vector<128x128xbf16>, vector<128x128xf32> -> vector<128x128xf32>
    %79 = arith.addf %74, %78 : vector<128x128xf32>
    %c34 = arith.constant 34 : index
    %c0_54 = arith.constant 0 : index
    %80 = vector.load %arg12[%c34, %c0_54] : memref<168x128xbf16, #tpu.memory_space<vmem>>, vector<128x128xbf16>
    %c8 = arith.constant 8 : index
    %c0_55 = arith.constant 0 : index
    %c0_56 = arith.constant 0 : index
    %81 = vector.load %arg5[%c8, %c0_55, %c0_56] : memref<9x128x128xbf16, #tpu.memory_space<vmem>>, vector<1x128x128xbf16>
    %82 = vector.shape_cast %81 : vector<1x128x128xbf16> to vector<128x128xbf16>
    %cst_57 = arith.constant dense<0.000000e+00> : vector<128x128xf32>
    %83 = tpu.matmul %80, %82, %cst_57 {dimension_numbers = #tpu.dot_dimension_numbers<[1], [0], [0], [1], [0, 0, 1, 1], [], []>} : vector<128x128xbf16>, vector<128x128xbf16>, vector<128x128xf32> -> vector<128x128xf32>
    %84 = arith.addf %79, %83 : vector<128x128xf32>
    %c0_58 = arith.constant 0 : index
    %c0_59 = arith.constant 0 : index
    %85 = vector.load %arg6[%c0_58, %c0_59] : memref<1x128xf32, #tpu.memory_space<vmem>>, vector<1x128xf32>
    %86 = vector.broadcast %85 : vector<1x128xf32> to vector<128x128xf32>
    %87 = arith.addf %84, %86 : vector<128x128xf32>
    %88 = arith.mulf %87, %87 : vector<128x128xf32>
    %89 = arith.truncf %88 : vector<128x128xf32> to vector<128x128xbf16>
    %c0_60 = arith.constant 0 : index
    %c0_61 = arith.constant 0 : index
    %90 = vector.load %arg7[%c0_60, %c0_61] : memref<128x128xbf16, #tpu.memory_space<vmem>>, vector<128x128xbf16>
    %cst_62 = arith.constant dense<0.000000e+00> : vector<128x128xf32>
    %91 = tpu.matmul %89, %90, %cst_62 {dimension_numbers = #tpu.dot_dimension_numbers<[1], [0], [0], [1], [0, 0, 1, 1], [], []>} : vector<128x128xbf16>, vector<128x128xbf16>, vector<128x128xf32> -> vector<128x128xf32>
    %c0_63 = arith.constant 0 : index
    %c0_64 = arith.constant 0 : index
    %92 = vector.load %arg8[%c0_63, %c0_64] : memref<1x128xf32, #tpu.memory_space<vmem>>, vector<1x128xf32>
    %93 = vector.broadcast %92 : vector<1x128xf32> to vector<128x128xf32>
    %94 = arith.addf %91, %93 : vector<128x128xf32>
    %cst_65 = arith.constant 9.99999997E-7 : f32
    %95 = vector.broadcast %cst_65 : f32 to vector<128x128xf32>
    %96 = arith.maximumf %94, %95 : vector<128x128xf32>
    %97 = math.rsqrt %96 : vector<128x128xf32>
    %98 = arith.mulf %87, %97 : vector<128x128xf32>
    %c0_66 = arith.constant 0 : index
    %c0_67 = arith.constant 0 : index
    %c17_68 = arith.constant 17 : index
    %c0_69 = arith.constant 0 : index
    %99 = vector.load %arg2[%c0_66, %c0_67, %c17_68, %c0_69] : memref<1x1x160x36xbf16, #tpu.memory_space<vmem>>, vector<1x1x128x36xbf16>
    %100 = vector.shape_cast %99 : vector<1x1x128x36xbf16> to vector<128x36xbf16>
    %c0_70 = arith.constant 0 : index
    %c0_71 = arith.constant 0 : index
    %101 = vector.load %arg9[%c0_70, %c0_71] : memref<36x128xbf16, #tpu.memory_space<vmem>>, vector<36x128xbf16>
    %cst_72 = arith.constant dense<0.000000e+00> : vector<128x128xf32>
    %102 = tpu.matmul %100, %101, %cst_72 {dimension_numbers = #tpu.dot_dimension_numbers<[1], [0], [0], [1], [0, 0, 1, 1], [], []>} : vector<128x36xbf16>, vector<36x128xbf16>, vector<128x128xf32> -> vector<128x128xf32>
    %103 = arith.addf %98, %102 : vector<128x128xf32>
    %c0_73 = arith.constant 0 : index
    %c0_74 = arith.constant 0 : index
    %104 = vector.load %arg10[%c0_73, %c0_74] : memref<1x128xf32, #tpu.memory_space<vmem>>, vector<1x128xf32>
    %105 = vector.broadcast %104 : vector<1x128xf32> to vector<128x128xf32>
    %106 = arith.addf %103, %105 : vector<128x128xf32>
    %c0_75 = arith.constant 0 : index
    %c0_76 = arith.constant 0 : index
    %c0_77 = arith.constant 0 : index
    %c0_78 = arith.constant 0 : index
    %107 = vector.load %arg11[%c0_75, %c0_76, %c0_77, %c0_78] : memref<1x1x128x128xf32, #tpu.memory_space<vmem>>, vector<1x1x128x128xf32>
    %108 = vector.shape_cast %107 : vector<1x1x128x128xf32> to vector<128x128xf32>
    %109 = vector.shape_cast %106 : vector<128x128xf32> to vector<1x1x128x128xf32>
    tpu.vector_store %arg11[%c0_75, %c0_76, %c0_77, %c0_78], %109 {strides = array<i32>} : memref<1x1x128x128xf32, #tpu.memory_space<vmem>>, vector<1x1x128x128xf32>,
    return
  }
  func.func @transform_0(%arg0: i32, %arg1: i32) -> (i32, i32, i32, i32) {
    %c0_i32 = arith.constant 0 : i32
    %c0_i32_0 = arith.constant 0 : i32
    %c0_i32_1 = arith.constant 0 : i32
    return %arg0, %arg1, %c0_i32, %c0_i32_0 : i32, i32, i32, i32
  }
  func.func @transform_1(%arg0: i32, %arg1: i32) -> (i32, i32) {
    %c0_i32 = arith.constant 0 : i32
    %c0_i32_0 = arith.constant 0 : i32
    %c0_i32_1 = arith.constant 0 : i32
    return %c0_i32, %c0_i32_0 : i32, i32
  }
  func.func @transform_2(%arg0: i32, %arg1: i32) -> (i32, i32) {
    %c0_i32 = arith.constant 0 : i32
    %c0_i32_0 = arith.constant 0 : i32
    %c0_i32_1 = arith.constant 0 : i32
    return %c0_i32, %c0_i32_0 : i32, i32
  }
  func.func @transform_3(%arg0: i32, %arg1: i32) -> (i32, i32, i32) {
    %c0_i32 = arith.constant 0 : i32
    %c0_i32_0 = arith.constant 0 : i32
    %c0_i32_1 = arith.constant 0 : i32
    %c0_i32_2 = arith.constant 0 : i32
    return %c0_i32, %c0_i32_0, %c0_i32_1 : i32, i32, i32
  }
  func.func @transform_4(%arg0: i32, %arg1: i32) -> (i32, i32) {
    %c0_i32 = arith.constant 0 : i32
    %c0_i32_0 = arith.constant 0 : i32
    %c0_i32_1 = arith.constant 0 : i32
    return %c0_i32, %c0_i32_0 : i32, i32
  }
  func.func @transform_5(%arg0: i32, %arg1: i32) -> (i32, i32) {
    %c0_i32 = arith.constant 0 : i32
    %c0_i32_0 = arith.constant 0 : i32
    %c0_i32_1 = arith.constant 0 : i32
    return %c0_i32, %c0_i32_0 : i32, i32
  }
  func.func @transform_6(%arg0: i32, %arg1: i32) -> (i32, i32) {
    %c0_i32 = arith.constant 0 : i32
    %c0_i32_0 = arith.constant 0 : i32
    %c0_i32_1 = arith.constant 0 : i32
    return %c0_i32, %c0_i32_0 : i32, i32
  }
  func.func @transform_7(%arg0: i32, %arg1: i32) -> (i32, i32) {
    %c0_i32 = arith.constant 0 : i32
    %c0_i32_0 = arith.constant 0 : i32
    %c0_i32_1 = arith.constant 0 : i32
    return %c0_i32, %c0_i32_0 : i32, i32
  }
  func.func @transform_8(%arg0: i32, %arg1: i32) -> (i32, i32) {
    %c0_i32 = arith.constant 0 : i32
    %c0_i32_0 = arith.constant 0 : i32
    %c0_i32_1 = arith.constant 0 : i32
    return %c0_i32, %c0_i32_0 : i32, i32
  }
  func.func @transform_9(%arg0: i32, %arg1: i32) -> (i32, i32, i32, i32) {
    %c0_i32 = arith.constant 0 : i32
    %c0_i32_0 = arith.constant 0 : i32
    %c0_i32_1 = arith.constant 0 : i32
    return %arg0, %arg1, %c0_i32, %c0_i32_0 : i32, i32, i32, i32
  }
}

</mosaic_0001>

<bundles_post_ra>
// kernel: residual_block_with_stride.1
= control target key start
LH: loop header
LB: loop body
LE: loop exit
PB: predicated region body
PF: predicated region fallthrough
CT: control target
= control target key end

     0   :  { %s5173_s30 = smov 0   ;;  %s5175_s10 = smov 0   ;;  %s5969_s0 = inlined_call_operand.vmem [shape: bf16[2,1,160,36], index: 0, kind: input, shape index: {}]   ;;  %s5970_s1 = inlined_call_operand.vmem [shape: bf16[36,128], index: 1, kind: input, shape index: {}]   ;;  %s5971_s2 = inlined_call_operand.vmem [shape: f32[1,128], index: 2, kind: input, shape index: {}]   ;;  %s5972_s3 = inlined_call_operand.vmem [shape: bf16[9,128,128], index: 3, kind: input, shape index: {}]   ;;  %s5973_s4 = inlined_call_operand.vmem [shape: f32[1,128], index: 4, kind: input, shape index: {}]   ;;  %s5974_s5 = inlined_call_operand.vmem [shape: bf16[128,128], index: 5, kind: input, shape index: {}]   ;;  %s5975_s6 = inlined_call_operand.vmem [shape: f32[1,128], index: 6, kind: input, shape index: {}]   ;;  %s5976_s7 = inlined_call_operand.vmem [shape: bf16[36,128], index: 7, kind: input, shape index: {}]   ;;  %s5977_s8 = inlined_call_operand.vmem [shape: f32[1,128], index: 8, kind: input, shape index: {}]   ;;  %s5978_s9 = inlined_call_operand.vmem [shape: f32[2,1,128,128], index: 9, kind: output, shape index: {}]  }
   0x1   :  { %s5177_s11 = smov 0  }
   0x2 LB: > { %s31_s12 = sadd.s32 1, %s5115_s10  ;;  %p3813_p0 = scmp.ge.s32.totalorder %s5119_s11, 1  ;;  %s5119_s11 = sphi %s5177_s11, %s19_s11   ;;  %s5115_s10 = sphi %s5175_s10, %s5980_s10   ;;  %s5111_s30 = sphi %s5173_s30, %s5979_s30  }
   0x3   : > { %p33_p1 = scmp.ge.s32.totalorder %s31_s12, 2  ;;  %p307_p2 = scmp.lt.s32.totalorder %s5119_s11, 3 }
   0x5   : > { %s5982_s12 = smov (%p33_p1, %s31_s12), 0  ;;  %p308_p3 = pnand %p3813_p0, %p307_p2 }
   0x6   : > { %v4914_v0 = vld [vmem:[%s5970_s1] sm:$0xff] (!%p308_p3)   ;;  %v4915_v1 = vld [vmem:[%s5970_s1 + $0x8] sm:$0xff] (!%p308_p3)   ;;  %p351_p4 = scmp.lt.s32.totalorder (!%p308_p3), %s5111_s30, 1  ;;  %v4916_v2 = vld [vmem:[%s5970_s1 + $0x10] ss:$0 sps:$4 sm:$0x33] (!%p308_p3)   ;;  %v675_v35 = vlaneseq (!%p308_p3) }
   0x7   : > { %311 = sbr.rel (%p308_p3) target bundleno = 919 (0x397), region = 56  ;;  %4389 = vmatprep.subr.bf16.mxu0 (!%p308_p3), %v4914_v0  ;;  %v4927_v3 = vld [vmem:[%s5972_s3 + $0xc0] sm:$0xff] (!%p308_p3)   ;;  %vm498_vm0 = vcmask (!%p308_p3), 1041408   ;;  %vm467_vm1 = vcmask (!%p308_p3), 293888   ;;  %v4928_v15 = vld [vmem:[%s5972_s3 + $0xc8] sm:$0xff] (!%p308_p3)   ;;  %v4930_v17 = vld [vmem:[%s5972_s3 + $0xd0] sm:$0xff] (!%p308_p3)  }
   0x8   : > { %4390 = vmatpush3.bf16.msra.mxu0 (!%p308_p3), %v4914_v0  ;;  %4511 = vmatprep.subr.bf16.mxu1 (!%p308_p3), %v4927_v3  ;;  %v500_v4 = vsel (!%p308_p3), %vm498_vm0, %v4916_v2, 0  ;;  %v4929_v16 = vld [vmem:[%s5972_s3 + $0x40] sm:$0xff] (!%p308_p3)   ;;  %v4931_v18 = vld [vmem:[%s5972_s3 + $0x48] sm:$0xff] (!%p308_p3)   ;;  %v5121_v19 = vmov (!%p308_p3), 0.0|0.0   ;;  %v4932_v22 = vld [vmem:[%s5972_s3 + $0xd8] sm:$0xff] (!%p308_p3)   ;;  %v5290_v36 = vshrl.u32 (!%p308_p3), %v675_v35, 7 }
   0x9   : > { %4391 = vmatprep.subr.bf16.mxu0 (!%p308_p3), %v4915_v1  ;;  %4512 = vmatpush3.bf16.msra.mxu1 (!%p308_p3), %v4927_v3  ;;  %v3841_v20 = vcombine.low (!%p308_p3), %v5121_v19, %v5121_v19  ;;  %v3842_v21 = vcombine.high (!%p308_p3), %v5121_v19, %v5121_v19  ;;  %v4933_v23 = vld [vmem:[%s5972_s3 + $0x50] sm:$0xff] (!%p308_p3)   ;;  %v4934_v24 = vld [vmem:[%s5972_s3 + $0xe0] sm:$0xff] (!%p308_p3)   ;;  %v4935_v25 = vld [vmem:[%s5972_s3 + $0x58] sm:$0xff] (!%p308_p3)   ;;  %vm1018_vm14 = vsmask.f32 (!%p308_p3), 7424 }
   0xa   : > { %4513 = vmatprep.subr.bf16.mxu1 (!%p308_p3), %v4928_v15  ;;  %v4936_v26 = vld [vmem:[%s5972_s3 + $0xe8] sm:$0xff] (!%p308_p3)   ;;  %v4937_v27 = vld [vmem:[%s5972_s3 + $0x60] sm:$0xff] (!%p308_p3)   ;;  %v4938_v28 = vld [vmem:[%s5972_s3 + $0xf0] sm:$0xff] (!%p308_p3)   ;;  %v5299_v41 = vadd.s32 (!%p308_p3), 8, %v5290_v36  ;;  %vm720_vm3 = vcmp.ge.s32.totalorder (!%p308_p3), %v5290_v36, 1 }
   0xb   : > { %904 = vst [vmem:[#allocation2] sm:$0xf] (!%p308_p3), %v3841_v20  ;;  %905 = vst [vmem:[#allocation2 + $0x4] sm:$0xf] (!%p308_p3), %v3842_v21  ;;  %v4940_v29 = vld [vmem:[%s5972_s3 + $0x68] sm:$0xff] (!%p308_p3)   ;;  %v4941_v30 = vld [vmem:[%s5972_s3 + $0xf8] sm:$0xff] (!%p308_p3)  }
   0xc   : > { %4392 = vmatpush3.bf16.msra.mxu0 (!%p308_p3), %v4915_v1  ;;  %922 = vst [vmem:[#allocation2 + $0x48] sm:$0xf] (!%p308_p3), %v3841_v20  ;;  %923 = vst [vmem:[#allocation2 + $0x4c] sm:$0xf] (!%p308_p3), %v3842_v21  ;;  %v4944_v31 = vld [vmem:[%s5972_s3 + $0x70] sm:$0xff] (!%p308_p3)   ;;  %v5278_v32 = vld [vmem:[%s5972_s3 + $0x100] sm:$0xff] (!%p308_p3)  }
   0xd   : > { %4885 = vmatprep.subr.msk.bf16.mxu0 (!%p308_p3), %vm498_vm0, %v4916_v2  ;;  %4514 = vmatpush3.bf16.msra.mxu1 (!%p308_p3), %v4928_v15  ;;  %v4947_v33 = vld [vmem:[%s5972_s3 + $0x78] sm:$0xff] (!%p308_p3)   ;;  %v5287_v34 = vld [vmem:[%s5972_s3] sm:$0xff] (!%p308_p3)   ;;  %vm743_vm5 = vcmp.le.s32.totalorder (!%p308_p3), %v5299_v41, 8 }
   0xe   : > { %s5984_s30 = smov (!%p351_p4, %s5111_s30), 1  ;;  %4515 = vmatprep.subr.bf16.mxu1 %v4930_v17  ;;  %v5295_v37 = vld [vmem:[%s5971_s2] ss:$0 sm:$0xff] }
   0xf   : > { %s4887_s21 = smul.u32 80, %s5984_s30  ;;  %s4140_s17 = sshll.u32 %s5984_s30, 7 }
  0x10   : > { %4394 = vmatpush3.bf16.msra.mxu0 %v500_v4 }
  0x11   : > { %s5209_s24 = scalar_lea.vmem %s5969_s0, %s4887_s21  ;;  %4415 = vmatprep.subr.bf16.mxu0 %v4929_v16  ;;  %4516 = vmatpush3.bf16.msra.mxu1 %v4930_v17  ;;  %s5910_s21 = scalar_lea.vmem %s5978_s9, %s4140_s17 }
  0x12   : > { %v4917_v5 = vld [vmem:[%s5209_s24] sm:$0xff]   ;;  %v4918_v6 = vld [vmem:[%s5209_s24 + $0x8] sm:$0xff]   ;;  %v4919_v7 = vld [vmem:[%s5209_s24 + $0x10] sm:$0xff]   ;;  %4517 = vmatprep.subr.bf16.mxu1 %v4932_v22 }
  0x13   : > { %4395 = vmatprep.mubr.msk.bf16.mxu0 %vm467_vm1, %v4917_v5  ;;  %v4920_v8 = vld [vmem:[%s5209_s24 + $0x18] sm:$0xff]   ;;  %v4921_v9 = vld [vmem:[%s5209_s24 + $0x20] sm:$0xff]   ;;  %v4922_v10 = vld [vmem:[%s5209_s24 + $0x28] sm:$0xff]  }
  0x14   : > { %4396 = vmatmul.mubr.msk.bf16.vlgmr.msra.gmra.mrb[0].mxu0 %vm467_vm1, %v4918_v6  ;;  %v4923_v11 = vld [vmem:[%s5209_s24 + $0x30] sm:$0xff]   ;;  %v4924_v12 = vld [vmem:[%s5209_s24 + $0x38] sm:$0xff]   ;;  %v4925_v13 = vld [vmem:[%s5209_s24 + $0x40] sm:$0xff]  }
  0x15   : > { %4399 = vmatprep.mubr.msk.bf16.mxu0 %vm467_vm1, %v4919_v7  ;;  %v4926_v14 = vld [vmem:[%s5209_s24 + $0x48] sm:$0xff]   ;;  %4416 = vmatpush3.bf16.msra.mxu0 %v4929_v16  ;;  %v925_v46 = vld [vmem:[#allocation2] sm:$0xf]  ;;  %v5304_v49 = vld [vmem:[#allocation2 + $0x4] sm:$0xf] }
  0x16   : > { %4417 = vmatprep.subr.bf16.mxu0 %v4931_v18  ;;  %4518 = vmatpush3.bf16.msra.mxu1 %v4932_v22  ;;  %v5311_v54 = vcombine.low %v925_v46, %v5304_v49 }
  0x17   : > { %4519 = vmatprep.subr.bf16.mxu1 %v4934_v24 }
  0x18   : > { %v1022_v1 = vshll.u32 %v5311_v54, 16  ;;  %v1020_v7 = vshrl.u32 %v5311_v54, 16 }
  0x19   : > { %4418 = vmatpush3.bf16.msra.mxu0 %v4931_v18 }
  0x1a   : > { %4419 = vmatprep.subr.bf16.mxu0 %v4933_v23  ;;  %4520 = vmatpush3.bf16.msra.mxu1 %v4934_v24 }
  0x1b   : > { %4521 = vmatprep.subr.bf16.mxu1 %v4936_v26 }
  0x1c   : > { %4400 = vmatmul.mubr.msk.bf16.gmra.mrb[4].mxu0 %vm467_vm1, %v4920_v8 }
  0x1d   : > { %4403 = vmatprep.mubr.msk.bf16.mxu0 %vm467_vm1, %v4921_v9  ;;  %4420 = vmatpush3.bf16.msra.mxu0 %v4933_v23 }
  0x1e   : > { %4421 = vmatprep.subr.bf16.mxu0 %v4935_v25  ;;  %4522 = vmatpush3.bf16.msra.mxu1 %v4936_v26 }
  0x1f   : > { %4523 = vmatprep.subr.bf16.mxu1 %v4938_v28 }
  0x21   : > { %4422 = vmatpush3.bf16.msra.mxu0 %v4935_v25 }
  0x22   : > { %4423 = vmatprep.subr.bf16.mxu0 %v4937_v27  ;;  %4524 = vmatpush3.bf16.msra.mxu1 %v4938_v28 }
  0x23   : > { %4525 = vmatprep.subr.bf16.mxu1 %v4941_v30 }
  0x24   : > { %4404 = vmatmul.mubr.msk.bf16.gmra.mrb[8].mxu0 %vm467_vm1, %v4922_v10 }
  0x25   : > { %4407 = vmatprep.mubr.msk.bf16.mxu0 %vm467_vm1, %v4923_v11  ;;  %4424 = vmatpush3.bf16.msra.mxu0 %v4937_v27 }
  0x26   : > { %4425 = vmatprep.subr.bf16.mxu0 %v4940_v29  ;;  %4526 = vmatpush3.bf16.msra.mxu1 %v4941_v30 }
  0x27   : > { %4543 = vmatprep.subr.bf16.mxu1 %v5278_v32 }
  0x29   : > { %4426 = vmatpush3.bf16.msra.mxu0 %v4940_v29 }
  0x2a   : > { %4427 = vmatprep.subr.bf16.mxu0 %v4944_v31 }
  0x2c   : > { %4408 = vmatmul.mubr.msk.bf16.gmra.mrb[12].mxu0 %vm467_vm1, %v4924_v12  ;;  %v1024_v12 = vrot.slane %v1022_v1, 1 }
  0x2d   : > { %4411 = vmatprep.mubr.msk.bf16.mxu0 %vm467_vm1, %v4925_v13  ;;  %4428 = vmatpush3.bf16.msra.mxu0 %v4944_v31 }
  0x2e   : > { %4429 = vmatprep.subr.bf16.mxu0 %v4947_v33  ;;  %v1025_v35 = vor.u32 %v1024_v12, %v1020_v7 }
  0x31   : > { %4430 = vmatpush3.bf16.msra.mxu0 %v4947_v33 }
  0x32   : > { %4447 = vmatprep.subr.bf16.mxu0 %v5287_v34 }
  0x34   : > { %4412 = vmatmul.mubr.msk.bf16.gmra.mrb[16].mxu0 %vm467_vm1, %v4926_v14 }
  0xe7   : > { %v4397_v38 = vpop.f32.mrb[0].mxu0 }
  0xe8   : > { %v545_v39 = vadd.f32 %v4397_v38, %v5295_v37  ;;  %v536_v40 = vpop.f32.mrb[1].mxu0 }
  0xe9   : > { %v4398_v42 = vpop.f32.mrb[2].mxu0 }
  0xea   : > { %vm617_vm2 = vcmp.gt.f32.partialorder %v545_v39, 0.0  ;;  %v637_v43 = vmul.f32 0.01, %v545_v39  ;;  %v548_v44 = vadd.f32 %v4398_v42, %v5295_v37  ;;  %v539_v45 = vpop.f32.mrb[3].mxu0 }
  0xec   : > { %v657_v47 = vsel %vm617_vm2, %v545_v39, %v637_v43  ;;  %vm618_vm4 = vcmp.gt.f32.partialorder %v548_v44, 0.0  ;;  %v638_v48 = vmul.f32 0.01, %v548_v44 }
  0xed   : > { %v806_v51 = vsel %vm720_vm3, %v657_v47, 0.0 }
  0xee   : > { %v658_v50 = vsel %vm618_vm4, %v548_v44, %v638_v48 }
  0xef   : > { %v807_v52 = vsel %vm743_vm5, %v658_v50, 0.0  ;;  %v4401_v53 = vpop.f32.mrb[4].mxu0 }
  0xf0   : > { %v4160_v55 = vpack.c.bf16 %v807_v52, %v806_v51  ;;  %v561_v56 = vadd.f32 %v4401_v53, %v5295_v37  ;;  %v552_v57 = vpop.f32.mrb[5].mxu0 }
  0xf1   : > { %v553_v58 = vadd.f32 %v5295_v37, %v552_v57  ;;  %v4402_v59 = vpop.f32.mrb[6].mxu0 }
  0xf2   : > { %4197 = vst [vmem:[#allocation2 + $0x8] sm:$0xff] %v4160_v55   ;;  %vm621_vm6 = vcmp.gt.f32.partialorder %v561_v56, 0.0  ;;  %v641_v60 = vmul.f32 0.01, %v561_v56  ;;  %v564_v61 = vadd.f32 %v4402_v59, %v5295_v37  ;;  %v555_v62 = vpop.f32.mrb[7].mxu0  ;;  %v4949_v55 = vld [vmem:[%s5972_s3 + $0x108] sm:$0xff]  }
  0xf3   : > { %vm619_vm7 = vcmp.gt.f32.partialorder %v553_v58, 0.0  ;;  %v639_v63 = vmul.f32 0.01, %v553_v58  ;;  %v556_v0 = vadd.f32 %v5295_v37, %v555_v62 }
  0xf4   : > { %v661_v2 = vsel %vm621_vm6, %v561_v56, %v641_v60  ;;  %vm622_vm8 = vcmp.gt.f32.partialorder %v564_v61, 0.0  ;;  %v642_v3 = vmul.f32 0.01, %v564_v61 }
  0xf5   : > { %v659_v4 = vsel %vm619_vm7, %v553_v58, %v639_v63  ;;  %vm620_vm9 = vcmp.gt.f32.partialorder %v556_v0, 0.0  ;;  %v640_v5 = vmul.f32 0.01, %v556_v0  ;;  %v810_v8 = vsel %vm720_vm3, %v661_v2, 0.0 }
  0xf6   : > { %v662_v6 = vsel %vm622_vm8, %v564_v61, %v642_v3  ;;  %v808_v13 = vsel %vm720_vm3, %v659_v4, 0.0 }
  0xf7   : > { %v811_v9 = vsel %vm743_vm5, %v662_v6, 0.0  ;;  %v660_v10 = vsel %vm620_vm9, %v556_v0, %v640_v5  ;;  %v4405_v11 = vpop.f32.mrb[8].mxu0  ;;  %v4953_v6 = vld [vmem:[%s5972_s3 + $0x110] sm:$0xff]  }
  0xf8   : > { %v4170_v14 = vpack.c.bf16 %v811_v9, %v810_v8  ;;  %v809_v15 = vsel %vm743_vm5, %v660_v10, 0.0  ;;  %v577_v16 = vadd.f32 %v4405_v11, %v5295_v37  ;;  %v568_v17 = vpop.f32.mrb[9].mxu0 }
  0xf9   : > { %v4165_v18 = vpack.c.bf16 %v809_v15, %v808_v13  ;;  %v569_v19 = vadd.f32 %v5295_v37, %v568_v17  ;;  %v4406_v20 = vpop.f32.mrb[10].mxu0  ;;  %v4939_v21 = vld [vmem:[#allocation2 + $0x8] sm:$0xff]  }
  0xfa   : > { %4199 = vst [vmem:[#allocation2 + $0x18] sm:$0xff] %v4170_v14   ;;  %vm625_vm10 = vcmp.gt.f32.partialorder %v577_v16, 0.0  ;;  %v645_v22 = vmul.f32 0.01, %v577_v16  ;;  %v580_v23 = vadd.f32 %v4406_v20, %v5295_v37  ;;  %v571_v24 = vpop.f32.mrb[11].mxu0  ;;  %4527 = vmatprep.mubr.bf16.mxu1 %v4939_v21  ;;  %v5331_v27 = vld [vmem:[#allocation2 + $0x8] sm:$0xff]  }
  0xfb   : > { %4198 = vst [vmem:[#allocation2 + $0x10] sm:$0xff] %v4165_v18   ;;  %vm623_vm11 = vcmp.gt.f32.partialorder %v569_v19, 0.0  ;;  %v643_v25 = vmul.f32 0.01, %v569_v19  ;;  %v572_v26 = vadd.f32 %v5295_v37, %v571_v24  ;;  %v1027_v38 = vshll.u32 %v5331_v27, 16 }
  0xfc   : > { %v665_v28 = vsel %vm625_vm10, %v577_v16, %v645_v22  ;;  %vm626_vm12 = vcmp.gt.f32.partialorder %v580_v23, 0.0  ;;  %v646_v29 = vmul.f32 0.01, %v580_v23  ;;  %v1031_v4 = vshrl.u32 %v5331_v27, 16  ;;  %v4955_v16 = vld [vmem:[%s5972_s3 + $0x8] sm:$0xff]  }
  0xfd   : > { %v663_v30 = vsel %vm623_vm11, %v569_v19, %v643_v25  ;;  %vm624_vm13 = vcmp.gt.f32.partialorder %v572_v26, 0.0  ;;  %v644_v31 = vmul.f32 0.01, %v572_v26  ;;  %v814_v39 = vsel %vm720_vm3, %v665_v28, 0.0  ;;  %v4957_v25 = vld [vmem:[%s5972_s3 + $0x118] sm:$0xff]  }
  0xfe   : > { %v666_v33 = vsel %vm626_vm12, %v580_v23, %v646_v29  ;;  %v812_v40 = vsel %vm720_vm3, %v663_v30, 0.0  ;;  %v1029_v50 = vrot.slane %v1027_v38, 1 }
  0xff   : > { %v815_v42 = vsel %vm743_vm5, %v666_v33, 0.0  ;;  %v664_v43 = vsel %vm624_vm13, %v572_v26, %v644_v31  ;;  %v4409_v44 = vpop.f32.mrb[12].mxu0  ;;  %v1843_v31 = vld [vmem:[#allocation2 + $0x8] sm:$0xf]  ;;  %v5378_v33 = vld [vmem:[#allocation2 + $0xc] sm:$0xf] }
 0x100   : > { %v4180_v45 = vpack.c.bf16 %v815_v42, %v814_v39  ;;  %v813_v46 = vsel %vm743_vm5, %v664_v43, 0.0  ;;  %v593_v47 = vadd.f32 %v4409_v44, %v5295_v37  ;;  %v584_v48 = vpop.f32.mrb[13].mxu0  ;;  %v1030_v58 = vsel %vm1018_vm14, %v1025_v35, %v1029_v50  ;;  %v4959_v42 = vld [vmem:[%s5972_s3 + $0x10] sm:$0xff]  }
 0x101   : > { %v4175_v51 = vpack.c.bf16 %v813_v46, %v812_v40  ;;  %v585_v52 = vadd.f32 %v5295_v37, %v584_v48  ;;  %v4410_v53 = vpop.f32.mrb[14].mxu0  ;;  %v4948_v60 = vld [vmem:[#allocation2 + $0x18] sm:$0xff]   ;;  %4431 = vmatprep.mubr.bf16.mxu0 %v1030_v58  ;;  %v1033_v12 = vor.u32 %v1031_v4, %v1029_v50 }
 0x102   : > { %4201 = vst [vmem:[#allocation2 + $0x28] sm:$0xff] %v4180_v45   ;;  %vm629_vm15 = vcmp.gt.f32.partialorder %v593_v47, 0.0  ;;  %v649_v56 = vmul.f32 0.01, %v593_v47  ;;  %v596_v57 = vadd.f32 %v4410_v53, %v5295_v37  ;;  %v587_v59 = vpop.f32.mrb[15].mxu0  ;;  %v4946_v63 = vld [vmem:[#allocation2 + $0x10] sm:$0xff]   ;;  %v3975_v53 = vcombine.low %v1843_v31, %v5378_v33 }
 0x103   : > { %4200 = vst [vmem:[#allocation2 + $0x20] sm:$0xff] %v4175_v51   ;;  %vm627_vm2 = vcmp.gt.f32.partialorder %v585_v52, 0.0  ;;  %v647_v61 = vmul.f32 0.01, %v585_v52  ;;  %v588_v62 = vadd.f32 %v5295_v37, %v587_v59  ;;  %v5350_v2 = vld [vmem:[#allocation2 + $0x10] sm:$0xff]   ;;  %4528 = vmatmul.mubr.bf16.vlgmr.msra.gmra.mrb[0].mxu1 %v4946_v63  ;;  %v5364_v15 = vld [vmem:[#allocation2 + $0x18] sm:$0xff]  }
 0x104   : > { %v669_v0 = vsel %vm629_vm15, %v593_v47, %v649_v56  ;;  %vm630_vm4 = vcmp.gt.f32.partialorder %v596_v57, 0.0  ;;  %v650_v1 = vmul.f32 0.01, %v596_v57  ;;  %4544 = vmatpush3.bf16.msra.mxu1 %v5278_v32  ;;  %4531 = vmatprep.mubr.bf16.mxu1 %v4948_v60  ;;  %v1035_v9 = vshll.u32 %v5350_v2, 16  ;;  %v4963_v58 = vld [vmem:[%s5972_s3 + $0x18] sm:$0xff]   ;;  %v4965_v60 = vld [vmem:[%s5972_s3 + $0x128] sm:$0xff]  }
 0x105   : > { %v667_v3 = vsel %vm627_vm2, %v585_v52, %v647_v61  ;;  %vm628_vm6 = vcmp.gt.f32.partialorder %v588_v62, 0.0  ;;  %v648_v5 = vmul.f32 0.01, %v588_v62  ;;  %v818_v7 = vsel %vm720_vm3, %v669_v0, 0.0  ;;  %4545 = vmatprep.subr.bf16.mxu1 %v4949_v55  ;;  %v4961_v52 = vld [vmem:[%s5972_s3 + $0x120] sm:$0xff]   ;;  %v5408_v61 = vld [vmem:[#allocation2 + $0x10] sm:$0xff]  }
 0x106   : > { %v670_v8 = vsel %vm630_vm4, %v596_v57, %v650_v1  ;;  %v816_v10 = vsel %vm720_vm3, %v667_v3, 0.0  ;;  %v1037_v19 = vrot.slane %v1035_v9, 1  ;;  %v1039_v20 = vshrl.u32 %v5350_v2, 16  ;;  %v4967_v3 = vld [vmem:[%s5972_s3 + $0x20] sm:$0xff]  }
 0x107   : > { %v819_v11 = vsel %vm743_vm5, %v670_v8, 0.0  ;;  %v668_v13 = vsel %vm628_vm6, %v588_v62, %v648_v5  ;;  %v4413_v14 = vpop.f32.mrb[16].mxu0  ;;  %v1043_v24 = vshll.u32 %v5364_v15, 16  ;;  %v1047_v47 = vshrl.u32 %v5364_v15, 16 }
 0x108   : > { %v4190_v32 = vpack.c.bf16 %v819_v11, %v818_v7  ;;  %v817_v17 = vsel %vm743_vm5, %v668_v13, 0.0  ;;  %v600_v18 = vpop.f32.mrb[17].mxu0  ;;  %4546 = vmatpush3.bf16.msra.mxu1 %v4949_v55  ;;  %v1038_v28 = vsel %vm1018_vm14, %v1033_v12, %v1037_v19  ;;  %v1041_v29 = vor.u32 %v1039_v20, %v1037_v19  ;;  %v4969_v12 = vld [vmem:[%s5972_s3 + $0x130] sm:$0xff]   ;;  %v1393_v13 = vld [vmem:[#allocation2] sm:$0xe]  ;;  %v5430_v19 = vld [vmem:[#allocation2 + $0x18] sm:$0xff]  }
 0x109   : > { %v4185_v21 = vpack.c.bf16 %v817_v17, %v816_v10  ;;  %v601_v22 = vadd.f32 %v5295_v37, %v600_v18  ;;  %v4414_v23 = vpop.f32.mrb[18].mxu0  ;;  %4432 = vmatmul.mubr.bf16.vlgmr.msra.gmra.mrb[20].mxu0 %v1038_v28  ;;  %v1045_v39 = vrot.slane %v1043_v24, 1  ;;  %4547 = vmatprep.subr.bf16.mxu1 %v4953_v6  ;;  %v5387_v43 = vld [vmem:[#allocation2 + $0x28] sm:$0xff]   ;;  %v1923_v4 = vshll.u32 %v3975_v53, 16 }
 0x10a   : > { %4203 = vst [vmem:[#allocation2 + $0x38] sm:$0xff] %v4190_v32   ;;  %v603_v26 = vpop.f32.mrb[19].mxu0  ;;  %v4954_v30 = vld [vmem:[#allocation2 + $0x20] sm:$0xff]   ;;  %4448 = vmatpush3.bf16.msra.mxu0 %v5287_v34  ;;  %v1059_v51 = vshll.u32 %v5387_v43, 16  ;;  %v1063_v8 = vshrl.u32 %v5387_v43, 16  ;;  %v1928_v10 = vshll.u32 %v5408_v61, 16 }
 0x10b   : > { %4202 = vst [vmem:[#allocation2 + $0x30] sm:$0xff] %v4185_v21   ;;  %vm631_vm7 = vcmp.gt.f32.partialorder %v601_v22, 0.0  ;;  %v651_v35 = vmul.f32 0.01, %v601_v22  ;;  %v604_v38 = vadd.f32 %v5295_v37, %v603_v26  ;;  %v5381_v40 = vld [vmem:[#allocation2 + $0x20] sm:$0xff]   ;;  %v1046_v46 = vsel %vm1018_vm14, %v1041_v29, %v1045_v39  ;;  %4532 = vmatmul.mubr.bf16.gmra.mrb[4].mxu1 %v4954_v30  ;;  %4449 = vmatprep.subr.bf16.mxu0 %v4955_v16  ;;  %v4956_v37 = vld [vmem:[#allocation2 + $0x28] sm:$0xff]  }
 0x10c   : > { %4435 = vmatprep.mubr.bf16.mxu0 %v1046_v46  ;;  %4548 = vmatpush3.bf16.msra.mxu1 %v4953_v6  ;;  %v1051_v48 = vshll.u32 %v5381_v40, 16  ;;  %v1049_v56 = vor.u32 %v1047_v47, %v1045_v39  ;;  %v1055_v36 = vshrl.u32 %v5381_v40, 16  ;;  %v1061_v63 = vrot.slane %v1059_v51, 1  ;;  %v4971_v17 = vld [vmem:[%s5972_s3 + $0x28] sm:$0xff]   ;;  %v5432_v21 = vld [vmem:[#allocation2 + $0x20] sm:$0xff]   ;;  %v4974_v26 = vld [vmem:[%s5972_s3 + $0x138] sm:$0xff]  }
 0x10d   : > { %v671_v44 = vsel %vm631_vm7, %v601_v22, %v651_v35  ;;  %vm632_vm8 = vcmp.gt.f32.partialorder %v604_v38, 0.0  ;;  %v652_v45 = vmul.f32 0.01, %v604_v38  ;;  %4535 = vmatprep.mubr.bf16.mxu1 %v4956_v37  ;;  %4549 = vmatprep.subr.bf16.mxu1 %v4957_v25  ;;  %v1925_v18 = vrot.slane %v1923_v4, 1  ;;  %v4982_v4 = vld [vmem:[%s5972_s3 + $0x80] sm:$0xff]  }
 0x10e   : > { %v820_v50 = vsel %vm720_vm3, %v671_v44, 0.0  ;;  %4450 = vmatpush3.bf16.msra.mxu0 %v4955_v16  ;;  %v1053_v57 = vrot.slane %v1051_v48, 1  ;;  %v1065_v14 = vor.u32 %v1063_v8, %v1061_v63  ;;  %v1921_v20 = vshrl.u32 %v3975_v53, 16  ;;  %v4977_v48 = vld [vmem:[%s5972_s3 + $0x140] sm:$0xff]   ;;  %v4979_v53 = vld [vmem:[%s5972_s3 + $0x38] sm:$0xff]  }
 0x10f   : > { %v672_v34 = vsel %vm632_vm8, %v604_v38, %v652_v45  ;;  %4451 = vmatprep.subr.bf16.mxu0 %v4959_v42  ;;  %v1936_v35 = vshll.u32 %v5430_v19, 16  ;;  %v3918_v38 = vcombine.low %v1393_v13, %v5304_v49  ;;  %v4976_v45 = vld [vmem:[%s5972_s3 + $0x30] sm:$0xff]   ;;  %v1944_v46 = vshll.u32 %v5432_v21, 16 }
 0x110   : > { %v821_v55 = vsel %vm743_vm5, %v672_v34, 0.0  ;;  %4550 = vmatpush3.bf16.msra.mxu1 %v4957_v25  ;;  %v1054_v41 = vsel %vm1018_vm14, %v1049_v56, %v1053_v57  ;;  %v1057_v62 = vor.u32 %v1055_v36, %v1053_v57  ;;  %v1930_v25 = vrot.slane %v1928_v10, 1  ;;  %v5454_v34 = vld [vmem:[#allocation2 + $0x28] sm:$0xff]  }
 0x111   : > { %v4195_v59 = vpack.c.bf16 %v821_v55, %v820_v50  ;;  %4436 = vmatmul.mubr.bf16.gmra.mrb[24].mxu0 %v1054_v41  ;;  %4551 = vmatprep.subr.bf16.mxu1 %v4961_v52  ;;  %v5417_v6 = vld [vmem:[#allocation2 + $0x38] sm:$0xff]   ;;  %v1926_v30 = vor.u32 %v1925_v18, %v1921_v20  ;;  %v1932_v37 = vshrl.u32 %v5408_v61, 16  ;;  %v1938_v50 = vrot.slane %v1936_v35, 1 }
 0x112   : > { %v4962_v0 = vld [vmem:[#allocation2 + $0x30] sm:$0xff]   ;;  %4452 = vmatpush3.bf16.msra.mxu0 %v4959_v42  ;;  %v1062_v5 = vsel %vm1018_vm14, %v1057_v62, %v1061_v63  ;;  %v4964_v7 = vld [vmem:[#allocation2 + $0x38] sm:$0xff]   ;;  %v1075_v11 = vshll.u32 %v5417_v6, 16  ;;  %v1079_v42 = vshrl.u32 %v5417_v6, 16  ;;  %v1415_v51 = vrot.slane %v3918_v38, 1 }
 0x113   : > { %4204 = vst [vmem:[#allocation2 + $0x40] sm:$0xff] %v4195_v59   ;;  %v5411_v1 = vld [vmem:[#allocation2 + $0x30] sm:$0xff]   ;;  %4439 = vmatprep.mubr.bf16.mxu0 %v1062_v5  ;;  %4536 = vmatmul.mubr.bf16.gmra.mrb[8].mxu1 %v4962_v0  ;;  %v1931_v39 = vsel %vm1018_vm14, %v1926_v30, %v1930_v25  ;;  %vm1414_vm3 = vcmask 1046528   ;;  %v1940_v56 = vshrl.u32 %v5430_v19, 16  ;;  %v1946_v57 = vrot.slane %v1944_v46, 1  ;;  %v4981_v59 = vld [vmem:[%s5972_s3 + $0x148] sm:$0xff]  }
 0x114   : > { %v1067_v9 = vshll.u32 %v5411_v1, 16  ;;  %4552 = vmatpush3.bf16.msra.mxu1 %v4961_v52  ;;  %4453 = vmatprep.subr.bf16.mxu0 %v4963_v58  ;;  %v1071_v32 = vshrl.u32 %v5411_v1, 16  ;;  %v1077_v24 = vrot.slane %v1075_v11, 1  ;;  %v1934_v52 = vor.u32 %v1932_v37, %v1930_v25  ;;  %v5461_v36 = vld [vmem:[#allocation2 + $0x30] sm:$0xff]   ;;  %v4987_v35 = vld [vmem:[%s5972_s3 + $0x158] sm:$0xff]  }
 0x115   : > { %4539 = vmatprep.mubr.bf16.mxu1 %v4964_v7  ;;  %4553 = vmatprep.subr.bf16.mxu1 %v4965_v60  ;;  %v1942_v41 = vor.u32 %v1940_v56, %v1938_v50  ;;  %v1952_v62 = vshll.u32 %v5454_v34, 16  ;;  %v1420_v0 = vrot.slane %v5364_v15, 1  ;;  %v1960_v8 = vshll.u32 %v5461_v36, 16 }
 0x116   : > { %v1069_v16 = vrot.slane %v1067_v9, 1  ;;  %4454 = vmatpush3.bf16.msra.mxu0 %v4963_v58  ;;  %v1081_v49 = vor.u32 %v1079_v42, %v1077_v24  ;;  %v1416_v58 = vrot.slane %v5331_v27, 1  ;;  %v1422_v10 = vrot.slane %v5381_v40, 1 }
 0x117   : > { %4455 = vmatprep.subr.bf16.mxu0 %v4967_v3  ;;  %v1947_v7 = vsel %vm1018_vm14, %v1942_v41, %v1946_v57  ;;  %v1424_v11 = vrot.slane %v5387_v43, 1  ;;  %v1954_v13 = vrot.slane %v1952_v62, 1  ;;  %v1428_v18 = vrot.slane %v5417_v6, 1 }
 0x118   : > { %v1070_v22 = vsel %vm1018_vm14, %v1065_v14, %v1069_v16  ;;  %v1073_v23 = vor.u32 %v1071_v32, %v1069_v16  ;;  %4554 = vmatpush3.bf16.msra.mxu1 %v4965_v60  ;;  %v1418_v60 = vrot.slane %v5350_v2, 1  ;;  %v5470_v63 = vsel %vm1414_vm3, %v1415_v51, %v1416_v58  ;;  %v4985_v14 = vld [vmem:[%s5972_s3 + $0x88] sm:$0xff]   ;;  %v5495_v16 = vld [vmem:[#allocation2 + $0x38] sm:$0xff]  }
 0x119   : > { %4440 = vmatmul.mubr.bf16.gmra.mrb[28].mxu0 %v1070_v22  ;;  %4555 = vmatprep.subr.bf16.mxu1 %v4969_v12  ;;  %v5498_v32 = vsel %vm1414_vm3, %v1420_v0, %v1422_v10  ;;  %v1956_v22 = vshrl.u32 %v5454_v34, 16  ;;  %v1962_v25 = vrot.slane %v1960_v8, 1  ;;  %v1968_v38 = vshll.u32 %v5495_v16, 16 }
 0x11a   : > { %v4970_v28 = vld [vmem:[#allocation2 + $0x40] sm:$0xff]   ;;  %v1078_v29 = vsel %vm1018_vm14, %v1073_v23, %v1077_v24  ;;  %4456 = vmatpush3.bf16.msra.mxu0 %v4967_v3  ;;  %v1939_v3 = vsel %vm1018_vm14, %v1934_v52, %v1938_v50  ;;  %v5479_v5 = vsel %vm1414_vm3, %v1416_v58, %v1418_v60  ;;  %v5484_v9 = vsel %vm1414_vm3, %v1418_v60, %v1420_v0  ;;  %v5538_v50 = vld [vmem:[#allocation2 + $0x48] ss:$0 sps:$4 sm:$0x11]  }
 0x11b   : > { %v5439_v31 = vld [vmem:[#allocation2 + $0x40] ss:$0 sps:$4 sm:$0x11]   ;;  %4443 = vmatprep.mubr.bf16.mxu0 %v1078_v29  ;;  %4540 = vmatmul.mubr.bf16.gmra.mrb[12].mxu1 %v4970_v28  ;;  %v5506_v24 = vsel %vm1414_vm3, %v1422_v10, %v1424_v11  ;;  %v1958_v30 = vor.u32 %v1956_v22, %v1954_v13  ;;  %v1970_v46 = vrot.slane %v1968_v38, 1  ;;  %v4993_v52 = vld [vmem:[%s5972_s3 + $0x168] sm:$0xff]   ;;  %v1984_v56 = vshll.u32 %v5538_v50, 16 }
 0x11c   : > { %4457 = vmatprep.subr.bf16.mxu0 %v4971_v17  ;;  %v1083_v44 = vshll.u32 %v5439_v31, 16  ;;  %4556 = vmatpush3.bf16.msra.mxu1 %v4969_v12  ;;  %v4983_v12 = vld [vmem:[%s5972_s3 + $0x150] sm:$0xff]   ;;  %v5503_v23 = vld [vmem:[#allocation2 + $0x40] sm:$0xff]   ;;  %v1430_v29 = vrot.slane %v5439_v31, 1  ;;  %v4997_v0 = vld [vmem:[%s5972_s3 + $0xa8] sm:$0xff]  }
 0x11d   : > { %4559 = vmatprep.mubr.bf16.mxu1 %v1931_v39  ;;  %4557 = vmatprep.subr.bf16.mxu1 %v4974_v26  ;;  %v4988_v31 = vld [vmem:[%s5972_s3 + $0x90] sm:$0xff]   ;;  %v4994_v58 = vld [vmem:[%s5972_s3 + $0xa0] sm:$0xff]   ;;  %v1986_v62 = vrot.slane %v1984_v56, 1  ;;  %v5003_v10 = vld [vmem:[%s5972_s3 + $0xb8] sm:$0xff]  }
 0x11e   : > { %v1085_v47 = vrot.slane %v1083_v44, 1  ;;  %4458 = vmatpush3.bf16.msra.mxu0 %v4971_v17  ;;  %v1426_v17 = vrot.slane %v5411_v1, 1  ;;  %v5521_v39 = vsel %vm1414_vm3, %v1428_v18, %v1430_v29  ;;  %v1976_v44 = vshll.u32 %v5503_v23, 16  ;;  %v5011_v22 = vld [vmem:[%s5972_s3 + $0x1b8] sm:$0xff]   ;;  %v5014_v29 = vld [vmem:[#allocation2 + $0x20] sm:$0xff]  }
 0x11f   : > { %4459 = vmatprep.subr.bf16.mxu0 %v4976_v45  ;;  %v5629_v38 = vld [vmem:[#allocation2 + $0x14] sm:$0xf] }
 0x120   : > { %v1086_v55 = vsel %vm1018_vm14, %v1081_v49, %v1085_v47  ;;  %4558 = vmatpush3.bf16.msra.mxu1 %v4974_v26  ;;  %v5509_v26 = vsel %vm1414_vm3, %v1424_v11, %v1426_v17  ;;  %v5512_v28 = vsel %vm1414_vm3, %v1426_v17, %v1428_v18  ;;  %v4991_v49 = vld [vmem:[%s5972_s3 + $0x98] sm:$0xff]   ;;  %v1972_v47 = vshrl.u32 %v5495_v16, 16  ;;  %v5004_v11 = vld [vmem:[%s5972_s3 + $0x188] sm:$0xff]  }
 0x121   : > { %4444 = vmatmul.mubr.bf16.gmra.mrb[32].mxu0 %v1086_v55  ;;  %4575 = vmatprep.subr.bf16.mxu1 %v4977_v48 }
 0x122   : > { %4460 = vmatpush3.bf16.msra.mxu0 %v4976_v45  ;;  %4463 = vmatprep.mubr.bf16.mxu0 %v5311_v54  ;;  %v1948_v54 = vshrl.u32 %v5432_v21, 16  ;;  %v1964_v45 = vshrl.u32 %v5461_v36, 16  ;;  %v1974_v51 = vor.u32 %v1972_v47, %v1970_v46 }
 0x123   : > { %4560 = vmatmul.mubr.bf16.vlgmr.msra.gmra.mrb[0].mxu1 %v1939_v3  ;;  %4461 = vmatprep.subr.bf16.mxu0 %v4979_v53  ;;  %v2179_v3 = vrot.slane %v5408_v61, 1  ;;  %v5000_v61 = vld [vmem:[%s5972_s3 + $0xb0] sm:$0xff]  }
 0x124   : > { %4576 = vmatpush3.bf16.msra.mxu1 %v4977_v48  ;;  %4563 = vmatprep.mubr.bf16.mxu1 %v1947_v7  ;;  %v1950_v20 = vor.u32 %v1948_v54, %v1946_v57  ;;  %v1966_v37 = vor.u32 %v1964_v45, %v1962_v25  ;;  %v1978_v48 = vrot.slane %v1976_v44, 1  ;;  %v2157_v57 = vld [vmem:[#allocation2 + $0x8] sm:$0xe]  ;;  %v4999_v7 = vld [vmem:[%s5972_s3 + $0x178] sm:$0xff]   ;;  %v2183_v54 = vrot.slane %v5432_v21, 1  ;;  %v5020_v44 = vld [vmem:[%s5972_s3 + $0x1e0] sm:$0xff]  }
 0x125   : > { %4577 = vmatprep.subr.bf16.mxu1 %v4981_v59  ;;  %v4008_v60 = vcombine.low %v2157_v57, %v5378_v33  ;;  %v2185_v21 = vrot.slane %v5454_v34, 1  ;;  %v5007_v34 = vld [vmem:[%s5972_s3 + $0x1a0] sm:$0xff]  }
 0x126   : > { %4462 = vmatpush3.bf16.msra.mxu0 %v4979_v53  ;;  %v1955_v42 = vsel %vm1018_vm14, %v1950_v20, %v1954_v13  ;;  %v5122_v53 = vmov 0   ;;  %v1971_v55 = vsel %vm1018_vm14, %v1966_v37, %v1970_v46  ;;  %v2187_v13 = vrot.slane %v5461_v36, 1  ;;  %v5023_v46 = vld [vmem:[%s5972_s3 + $0x1e8] sm:$0xff]   ;;  %v5641_v37 = vld [vmem:[#allocation2 + $0x18] sm:$0xff]  }
 0x127   : > { %4479 = vmatprep.subr.bf16.mxu0 %v4982_v4  ;;  %924 = vst [vmem:[#allocation2 + $0x50] sm:$0xf] %v5122_v53  ;;  %v2189_v36 = vrot.slane %v5495_v16, 1  ;;  %v5009_v16 = vld [vmem:[%s5972_s3 + $0x1b0] sm:$0xff]   ;;  %v5025_v53 = vld [vmem:[#allocation2 + $0x48] sm:$0xff]  }
 0x128   : > { %4578 = vmatpush3.bf16.msra.mxu1 %v4981_v59  ;;  %v1980_v59 = vshrl.u32 %v5503_v23, 16  ;;  %v2188_v17 = vsel %vm1414_vm3, %v2185_v21, %v2187_v13 }
 0x129   : > { %4464 = vmatmul.mubr.bf16.vlgmr.msra.gmra.mrb[20].mxu0 %v5331_v27  ;;  %4579 = vmatprep.subr.bf16.mxu1 %v4983_v12  ;;  %v1963_v27 = vsel %vm1018_vm14, %v1958_v30, %v1962_v25  ;;  %v2190_v18 = vsel %vm1414_vm3, %v2187_v13, %v2189_v36  ;;  %v5012_v25 = vld [vmem:[%s5972_s3 + $0x1c0] sm:$0xff]   ;;  %v5016_v30 = vld [vmem:[%s5972_s3 + $0x1d0] sm:$0xff]  }
 0x12a   : > { %4467 = vmatprep.mubr.bf16.mxu0 %v5350_v2  ;;  %4480 = vmatpush3.bf16.msra.mxu0 %v4982_v4  ;;  %v4989_v2 = vld [vmem:[%s5972_s3 + $0x160] sm:$0xff]   ;;  %v1982_v41 = vor.u32 %v1980_v59, %v1978_v48  ;;  %v2178_v4 = vrot.slane %v4008_v60, 1  ;;  %v5656_v60 = vld [vmem:[#allocation2 + $0x30] sm:$0xff]  }
 0x12b   : > { %4564 = vmatmul.mubr.bf16.gmra.mrb[4].mxu1 %v1955_v42  ;;  %4481 = vmatprep.subr.bf16.mxu0 %v4985_v14  ;;  %v5019_v42 = vld [vmem:[%s5972_s3 + $0x1d8] sm:$0xff]  }
 0x12c   : > { %4580 = vmatpush3.bf16.msra.mxu1 %v4983_v12  ;;  %4567 = vmatprep.mubr.bf16.mxu1 %v1963_v27  ;;  %v1987_v33 = vsel %vm1018_vm14, %v1982_v41, %v1986_v62  ;;  %v2180_v8 = vsel %vm1414_vm3, %v2178_v4, %v2179_v3  ;;  %v5018_v27 = vld [vmem:[#allocation2 + $0x30] sm:$0xff]   ;;  %v5029_v41 = vld [vmem:[%s5972_s3 + $0x200] sm:$0xff]  }
 0x12d   : > { %4581 = vmatprep.subr.bf16.mxu1 %v4987_v35 }
 0x12e   : > { %4482 = vmatpush3.bf16.msra.mxu0 %v4985_v14  ;;  %v2186_v14 = vsel %vm1414_vm3, %v2183_v54, %v2185_v21 }
 0x12f   : > { %4483 = vmatprep.subr.bf16.mxu0 %v4988_v31 }
 0x130   : > { %4582 = vmatpush3.bf16.msra.mxu1 %v4987_v35  ;;  %v2606_v35 = vld [vmem:[#allocation2 + $0x10] sm:$0xf] }
 0x131   : > { %4468 = vmatmul.mubr.bf16.gmra.mrb[24].mxu0 %v5364_v15  ;;  %4583 = vmatprep.subr.bf16.mxu1 %v4989_v2  ;;  %v1979_v15 = vsel %vm1018_vm14, %v1974_v51, %v1978_v48  ;;  %v5643_v48 = vld [vmem:[#allocation2 + $0x20] sm:$0xff]  }
 0x132   : > { %4471 = vmatprep.mubr.bf16.mxu0 %v5381_v40  ;;  %4484 = vmatpush3.bf16.msra.mxu0 %v4988_v31  ;;  %v4995_v40 = vld [vmem:[%s5972_s3 + $0x170] sm:$0xff]   ;;  %v4065_v31 = vcombine.low %v2606_v35, %v5629_v38  ;;  %v2699_v56 = vshll.u32 %v5643_v48, 16  ;;  %v2703_v62 = vshrl.u32 %v5643_v48, 16  ;;  %v5040_v35 = vld [vmem:[%s5972_s3 + $0x228] sm:$0xff]  }
 0x133   : > { %4568 = vmatmul.mubr.bf16.gmra.mrb[8].mxu1 %v1971_v55  ;;  %4485 = vmatprep.subr.bf16.mxu0 %v4991_v49 }
 0x134   : > { %4584 = vmatpush3.bf16.msra.mxu1 %v4989_v2  ;;  %4571 = vmatprep.mubr.bf16.mxu1 %v1979_v15  ;;  %v2686_v45 = vshll.u32 %v4065_v31, 16  ;;  %v5021_v2 = vld [vmem:[#allocation2 + $0x38] sm:$0xff]   ;;  %v2684_v51 = vshrl.u32 %v4065_v31, 16 }
 0x135   : > { %4585 = vmatprep.subr.bf16.mxu1 %v4993_v52  ;;  %v5028_v15 = vld [vmem:[%s5972_s3 + $0x1f8] sm:$0xff]  }
 0x136   : > { %4486 = vmatpush3.bf16.msra.mxu0 %v4991_v49  ;;  %v5022_v49 = vld [vmem:[#allocation2 + $0x40] sm:$0xff]   ;;  %v2688_v47 = vrot.slane %v2686_v45, 1  ;;  %v5041_v45 = vld [vmem:[%s5972_s3 + $0x230] sm:$0xff]  }
 0x137   : > { %4487 = vmatprep.subr.bf16.mxu0 %v4994_v58 }
 0x138   : > { %4586 = vmatpush3.bf16.msra.mxu1 %v4993_v52  ;;  %v2691_v52 = vshll.u32 %v5641_v37, 16  ;;  %v2689_v55 = vor.u32 %v2688_v47, %v2684_v51 }
 0x139   : > { %4472 = vmatmul.mubr.bf16.gmra.mrb[28].mxu0 %v5387_v43  ;;  %4587 = vmatprep.subr.bf16.mxu1 %v4995_v40  ;;  %v5002_v43 = vld [vmem:[%s5972_s3 + $0x180] sm:$0xff]  }
 0x13a   : > { %4475 = vmatprep.mubr.bf16.mxu0 %v5411_v1  ;;  %4488 = vmatpush3.bf16.msra.mxu0 %v4994_v58  ;;  %v2181_v1 = vrot.slane %v5430_v19, 1  ;;  %v2693_v57 = vrot.slane %v2691_v52, 1  ;;  %v5653_v58 = vld [vmem:[#allocation2 + $0x28] sm:$0xff]  }
 0x13b   : > { %4572 = vmatmul.mubr.bf16.gmra.mrb[12].mxu1 %v1987_v33  ;;  %4489 = vmatprep.subr.bf16.mxu0 %v4997_v0  ;;  %v2711_v21 = vshrl.u32 %v5653_v58, 16  ;;  %v2946_v51 = vrot.slane %v5653_v58, 1 }
 0x13c   : > { %4588 = vmatpush3.bf16.msra.mxu1 %v4995_v40  ;;  %4591 = vmatprep.mubr.bf16.mxu1 %v2180_v8  ;;  %v2182_v19 = vsel %vm1414_vm3, %v2179_v3, %v2181_v1  ;;  %v2184_v12 = vsel %vm1414_vm3, %v2181_v1, %v2183_v54  ;;  %v2694_v59 = vsel %vm1018_vm14, %v2689_v55, %v2693_v57  ;;  %v2701_v40 = vrot.slane %v2699_v56, 1 }
 0x13d   : > { %4589 = vmatprep.subr.bf16.mxu1 %v4999_v7  ;;  %v2695_v3 = vshrl.u32 %v5641_v37, 16 }
 0x13e   : > { %4490 = vmatpush3.bf16.msra.mxu0 %v4997_v0  ;;  %v2707_v0 = vshll.u32 %v5653_v58, 16  ;;  %v2705_v4 = vor.u32 %v2703_v62, %v2701_v40 }
 0x13f   : > { %4491 = vmatprep.subr.bf16.mxu0 %v5000_v61  ;;  %v2697_v33 = vor.u32 %v2695_v3, %v2693_v57  ;;  %v5048_v3 = vld [vmem:[%s5974_s5 + $0x18] sm:$0xff]  }
 0x140   : > { %4590 = vmatpush3.bf16.msra.mxu1 %v4999_v7  ;;  %v2715_v7 = vshll.u32 %v5656_v60, 16  ;;  %v2709_v8 = vrot.slane %v2707_v0, 1  ;;  %v5047_v0 = vld [vmem:[%s5974_s5 + $0x10] sm:$0xff]  }
 0x141   : > { %4476 = vmatmul.mubr.bf16.gmra.mrb[32].mxu0 %v5417_v6  ;;  %4607 = vmatprep.subr.bf16.mxu1 %v5002_v43  ;;  %v5005_v6 = vld [vmem:[%s5972_s3 + $0x190] sm:$0xff]   ;;  %v2702_v1 = vsel %vm1018_vm14, %v2697_v33, %v2701_v40 }
 0x142   : > { %4492 = vmatpush3.bf16.msra.mxu0 %v5000_v61  ;;  %4495 = vmatprep.mubr.bf16.mxu0 %v5470_v63  ;;  %v5006_v63 = vld [vmem:[%s5972_s3 + $0x198] sm:$0xff]   ;;  %v5032_v61 = vld [vmem:[%s5972_s3 + $0x208] sm:$0xff]   ;;  %v2717_v54 = vrot.slane %v2715_v7, 1  ;;  %v5051_v33 = vld [vmem:[%s5974_s5 + $0x30] sm:$0xff]  }
 0x143   : > { %4592 = vmatmul.mubr.bf16.vlgmr.msra.gmra.mrb[0].mxu1 %v2182_v19  ;;  %4493 = vmatprep.subr.bf16.mxu0 %v5003_v10  ;;  %v5033_v19 = vld [vmem:[%s5972_s3 + $0x210] sm:$0xff]   ;;  %v5050_v7 = vld [vmem:[%s5974_s5 + $0x28] sm:$0xff]  }
 0x144   : > { %4608 = vmatpush3.bf16.msra.mxu1 %v5002_v43  ;;  %4595 = vmatprep.mubr.bf16.mxu1 %v2184_v12  ;;  %v5668_v43 = vld [vmem:[#allocation2 + $0x38] sm:$0xff]   ;;  %v2719_v12 = vshrl.u32 %v5656_v60, 16 }
 0x145   : > { %4609 = vmatprep.subr.bf16.mxu1 %v5004_v11  ;;  %v2950_v55 = vrot.slane %v5668_v43, 1 }
 0x146   : > { %4494 = vmatpush3.bf16.msra.mxu0 %v5003_v10  ;;  %v2710_v10 = vsel %vm1018_vm14, %v2705_v4, %v2709_v8  ;;  %v2721_v13 = vor.u32 %v2719_v12, %v2717_v54  ;;  %v5049_v4 = vld [vmem:[%s5974_s5 + $0x20] sm:$0xff]  }
 0x148   : > { %4610 = vmatpush3.bf16.msra.mxu1 %v5004_v11  ;;  %v5672_v11 = vld [vmem:[#allocation2 + $0x40] sm:$0xff]  }
 0x149   : > { %4496 = vmatmul.mubr.bf16.vlgmr.msra.gmra.mrb[20].mxu0 %v5479_v5  ;;  %4611 = vmatprep.subr.bf16.mxu1 %v5005_v6  ;;  %v2191_v5 = vrot.slane %v5503_v23, 1 }
 0x14a   : > { %4499 = vmatprep.mubr.bf16.mxu0 %v5484_v9  ;;  %v5008_v9 = vld [vmem:[%s5972_s3 + $0x1a8] sm:$0xff]  }
 0x14b   : > { %4596 = vmatmul.mubr.bf16.gmra.mrb[4].mxu1 %v2186_v14  ;;  %v2192_v20 = vsel %vm1414_vm3, %v2189_v36, %v2191_v5  ;;  %v2713_v14 = vor.u32 %v2711_v21, %v2709_v8  ;;  %v5684_v36 = vld [vmem:[#allocation2 + $0x48] sm:$0xff]   ;;  %v5052_v8 = vld [vmem:[%s5974_s5 + $0x38] sm:$0xff]  }
 0x14c   : > { %4612 = vmatpush3.bf16.msra.mxu1 %v5005_v6  ;;  %4599 = vmatprep.mubr.bf16.mxu1 %v2188_v17  ;;  %v2723_v6 = vshll.u32 %v5668_v43, 16 }
 0x14d   : > { %4613 = vmatprep.subr.bf16.mxu1 %v5006_v63 }
 0x14e   : > { %v2725_v17 = vrot.slane %v2723_v6, 1 }
 0x150   : > { %4614 = vmatpush3.bf16.msra.mxu1 %v5006_v63  ;;  %v2731_v63 = vshll.u32 %v5672_v11, 16 }
 0x151   : > { %4500 = vmatmul.mubr.bf16.gmra.mrb[24].mxu0 %v5498_v32  ;;  %4615 = vmatprep.subr.bf16.mxu1 %v5007_v34  ;;  %v2193_v32 = vrot.slane %v5538_v50, 1  ;;  %v5024_v50 = vld [vmem:[%s5972_s3 + $0x1f0] sm:$0xff]  }
 0x152   : > { %4503 = vmatprep.mubr.bf16.mxu0 %v5506_v24  ;;  %v5010_v24 = vld [vmem:[#allocation2 + $0x10] sm:$0xff]  }
 0x153   : > { %4600 = vmatmul.mubr.bf16.gmra.mrb[8].mxu1 %v2190_v18  ;;  %v2194_v23 = vsel %vm1414_vm3, %v2191_v5, %v2193_v32  ;;  %v2718_v5 = vsel %vm1018_vm14, %v2713_v14, %v2717_v54  ;;  %v2733_v18 = vrot.slane %v2731_v63, 1  ;;  %v5037_v32 = vld [vmem:[%s5972_s3 + $0x220] sm:$0xff]  }
 0x154   : > { %4616 = vmatpush3.bf16.msra.mxu1 %v5007_v34  ;;  %4603 = vmatprep.mubr.bf16.mxu1 %v2192_v20  ;;  %v5036_v34 = vld [vmem:[%s5972_s3 + $0x218] sm:$0xff]   ;;  %v2739_v20 = vshll.u32 %v5684_v36, 16 }
 0x155   : > { %4617 = vmatprep.subr.bf16.mxu1 %v5008_v9 }
 0x158   : > { %4618 = vmatpush3.bf16.msra.mxu1 %v5008_v9  ;;  %v2726_v9 = vsel %vm1018_vm14, %v2721_v13, %v2725_v17 }
 0x159   : > { %4504 = vmatmul.mubr.bf16.gmra.mrb[28].mxu0 %v5509_v26  ;;  %4619 = vmatprep.subr.bf16.mxu1 %v5009_v16  ;;  %v5013_v26 = vld [vmem:[#allocation2 + $0x18] sm:$0xff]  }
 0x15a   : > { %4507 = vmatprep.mubr.bf16.mxu0 %v5512_v28  ;;  %v5015_v28 = vld [vmem:[%s5972_s3 + $0x1c8] sm:$0xff]  }
 0x15b   : > { %4604 = vmatmul.mubr.bf16.gmra.mrb[12].mxu1 %v2194_v23  ;;  %v2727_v23 = vshrl.u32 %v5668_v43, 16 }
 0x15c   : > { %4620 = vmatpush3.bf16.msra.mxu1 %v5009_v16  ;;  %4623 = vmatprep.mubr.bf16.mxu1 %v5010_v24  ;;  %v5042_v16 = vld [vmem:[#allocation2 + $0x50] ss:$0 sps:$4 sm:$0x11]  }
 0x15d   : > { %4621 = vmatprep.subr.bf16.mxu1 %v5011_v22  ;;  %v2956_v40 = vrot.slane %v5042_v16, 1 }
 0x160   : > { %4622 = vmatpush3.bf16.msra.mxu1 %v5011_v22  ;;  %v2735_v22 = vshrl.u32 %v5672_v11, 16 }
 0x161   : > { %4508 = vmatmul.mubr.bf16.gmra.mrb[32].mxu0 %v5521_v39  ;;  %4639 = vmatprep.subr.bf16.mxu1 %v5012_v25  ;;  %v5017_v39 = vld [vmem:[#allocation2 + $0x28] sm:$0xff]  }
 0x162   : > { %v2737_v24 = vor.u32 %v2735_v22, %v2733_v18 }
 0x163   : > { %4624 = vmatmul.mubr.bf16.vlgmr.msra.gmra.mrb[0].mxu1 %v5013_v26  ;;  %v2729_v26 = vor.u32 %v2727_v23, %v2725_v17 }
 0x164   : > { %4640 = vmatpush3.bf16.msra.mxu1 %v5012_v25  ;;  %4627 = vmatprep.mubr.bf16.mxu1 %v5014_v29  ;;  %v2741_v25 = vrot.slane %v2739_v20, 1  ;;  %v2747_v29 = vshll.u32 %v5042_v16, 16  ;;  %v5761_v20 = vld [vmem:[%s5973_s4] ss:$0 sm:$0xff] }
 0x165   : > { %4641 = vmatprep.subr.bf16.mxu1 %v5015_v28 }
 0x168   : > { %4642 = vmatpush3.bf16.msra.mxu1 %v5015_v28  ;;  %v2743_v28 = vshrl.u32 %v5684_v36, 16 }
 0x169   : > { %4643 = vmatprep.subr.bf16.mxu1 %v5016_v30 }
 0x16a   : > { %v2745_v31 = vor.u32 %v2743_v28, %v2741_v25 }
 0x16b   : > { %4628 = vmatmul.mubr.bf16.gmra.mrb[4].mxu1 %v5017_v39  ;;  %v2734_v39 = vsel %vm1018_vm14, %v2729_v26, %v2733_v18 }
 0x16c   : > { %4644 = vmatpush3.bf16.msra.mxu1 %v5016_v30  ;;  %4631 = vmatprep.mubr.bf16.mxu1 %v5018_v27  ;;  %v2920_v30 = vld [vmem:[#allocation2 + $0x10] sm:$0xe] }
 0x16d   : > { %4645 = vmatprep.subr.bf16.mxu1 %v5019_v42  ;;  %v4098_v27 = vcombine.low %v2920_v30, %v5629_v38  ;;  %v5044_v38 = vld [vmem:[%s5972_s3 + $0x238] sm:$0xff]  }
 0x170   : > { %4646 = vmatpush3.bf16.msra.mxu1 %v5019_v42  ;;  %v2742_v42 = vsel %vm1018_vm14, %v2737_v24, %v2741_v25 }
 0x171   : > { %4647 = vmatprep.subr.bf16.mxu1 %v5020_v44 }
 0x173   : > { %4632 = vmatmul.mubr.bf16.gmra.mrb[8].mxu1 %v5021_v2  ;;  %v2941_v2 = vrot.slane %v4098_v27, 1 }
 0x174   : > { %4648 = vmatpush3.bf16.msra.mxu1 %v5020_v44  ;;  %4635 = vmatprep.mubr.bf16.mxu1 %v5022_v49  ;;  %v2749_v44 = vrot.slane %v2747_v29, 1  ;;  %v2942_v49 = vrot.slane %v5641_v37, 1 }
 0x175   : > { %4649 = vmatprep.subr.bf16.mxu1 %v5023_v46 }
 0x176   : > { %v2943_v47 = vsel %vm1414_vm3, %v2941_v2, %v2942_v49 }
 0x178   : > { %4650 = vmatpush3.bf16.msra.mxu1 %v5023_v46  ;;  %v2750_v46 = vsel %vm1018_vm14, %v2745_v31, %v2749_v44 }
 0x179   : > { %4651 = vmatprep.subr.bf16.mxu1 %v5024_v50 }
 0x17b   : > { %4636 = vmatmul.mubr.bf16.gmra.mrb[12].mxu1 %v5025_v53  ;;  %v2948_v53 = vrot.slane %v5656_v60, 1  ;;  %v5045_v60 = vld [vmem:[%s5974_s5] sm:$0xff]  }
 0x17c   : > { %4652 = vmatpush3.bf16.msra.mxu1 %v5024_v50  ;;  %4655 = vmatprep.mubr.bf16.mxu1 %v2694_v59  ;;  %v2944_v50 = vrot.slane %v5643_v48, 1  ;;  %v2952_v48 = vrot.slane %v5672_v11, 1 }
 0x17d   : > { %4653 = vmatprep.subr.bf16.mxu1 %v5028_v15  ;;  %v2949_v56 = vsel %vm1414_vm3, %v2946_v51, %v2948_v53  ;;  %v2951_v57 = vsel %vm1414_vm3, %v2948_v53, %v2950_v55  ;;  %4703 = vmatprep.subr.bf16.mxu0 %v5045_v60 }
 0x17e   : > { %v2945_v52 = vsel %vm1414_vm3, %v2942_v49, %v2944_v50  ;;  %v2947_v37 = vsel %vm1414_vm3, %v2944_v50, %v2946_v51  ;;  %v2953_v58 = vsel %vm1414_vm3, %v2950_v55, %v2952_v48  ;;  %4704 = vmatpush3.bf16.msra.mxu0 %v5045_v60  ;;  %v5054_v51 = vld [vmem:[%s5976_s7 + $0x8] sm:$0xff]  }
 0x180   : > { %4654 = vmatpush3.bf16.msra.mxu1 %v5028_v15  ;;  %v2954_v15 = vrot.slane %v5684_v36, 1 }
 0x181   : > { %4671 = vmatprep.subr.bf16.mxu1 %v5029_v41 }
 0x182   : > { %v2955_v59 = vsel %vm1414_vm3, %v2952_v48, %v2954_v15  ;;  %v2957_v62 = vsel %vm1414_vm3, %v2954_v15, %v2956_v40  ;;  %v5055_v48 = vld [vmem:[%s5976_s7 + $0x10] ss:$0 sps:$4 sm:$0x33]  }
 0x183   : > { %4656 = vmatmul.mubr.bf16.vlgmr.msra.gmra.mrb[0].mxu1 %v2702_v1 }
 0x184   : > { %4672 = vmatpush3.bf16.msra.mxu1 %v5029_v41  ;;  %4659 = vmatprep.mubr.bf16.mxu1 %v2710_v10  ;;  %v5046_v41 = vld [vmem:[%s5974_s5 + $0x8] sm:$0xff]  }
 0x185   : > { %4673 = vmatprep.subr.bf16.mxu1 %v5032_v61  ;;  %4705 = vmatprep.subr.bf16.mxu0 %v5046_v41 }
 0x186   : > { %4706 = vmatpush3.bf16.msra.mxu0 %v5046_v41 }
 0x187   : > { %4707 = vmatprep.subr.bf16.mxu0 %v5047_v0 }
 0x188   : > { %4674 = vmatpush3.bf16.msra.mxu1 %v5032_v61  ;;  %v5053_v61 = vld [vmem:[%s5976_s7] sm:$0xff]  }
 0x189   : > { %4675 = vmatprep.subr.bf16.mxu1 %v5033_v19 }
 0x18a   : > { %4708 = vmatpush3.bf16.msra.mxu0 %v5047_v0 }
 0x18b   : > { %4660 = vmatmul.mubr.bf16.gmra.mrb[4].mxu1 %v2718_v5  ;;  %4709 = vmatprep.subr.bf16.mxu0 %v5048_v3 }
 0x18c   : > { %4676 = vmatpush3.bf16.msra.mxu1 %v5033_v19  ;;  %4663 = vmatprep.mubr.bf16.mxu1 %v2726_v9 }
 0x18d   : > { %4677 = vmatprep.subr.bf16.mxu1 %v5036_v34 }
 0x18e   : > { %4710 = vmatpush3.bf16.msra.mxu0 %v5048_v3 }
 0x18f   : > { %4711 = vmatprep.subr.bf16.mxu0 %v5049_v4 }
 0x190   : > { %4678 = vmatpush3.bf16.msra.mxu1 %v5036_v34 }
 0x191   : > { %4679 = vmatprep.subr.bf16.mxu1 %v5037_v32 }
 0x192   : > { %4712 = vmatpush3.bf16.msra.mxu0 %v5049_v4 }
 0x193   : > { %4664 = vmatmul.mubr.bf16.gmra.mrb[8].mxu1 %v2734_v39  ;;  %4713 = vmatprep.subr.bf16.mxu0 %v5050_v7 }
 0x194   : > { %4680 = vmatpush3.bf16.msra.mxu1 %v5037_v32  ;;  %4667 = vmatprep.mubr.bf16.mxu1 %v2742_v42 }
 0x195   : > { %4681 = vmatprep.subr.bf16.mxu1 %v5040_v35 }
 0x196   : > { %4714 = vmatpush3.bf16.msra.mxu0 %v5050_v7 }
 0x197   : > { %4715 = vmatprep.subr.bf16.mxu0 %v5051_v33 }
 0x198   : > { %4682 = vmatpush3.bf16.msra.mxu1 %v5040_v35 }
 0x199   : > { %4683 = vmatprep.subr.bf16.mxu1 %v5041_v45 }
 0x19a   : > { %4716 = vmatpush3.bf16.msra.mxu0 %v5051_v33 }
 0x19b   : > { %4668 = vmatmul.mubr.bf16.gmra.mrb[12].mxu1 %v2750_v46  ;;  %4717 = vmatprep.subr.bf16.mxu0 %v5052_v8 }
 0x19c   : > { %4684 = vmatpush3.bf16.msra.mxu1 %v5041_v45  ;;  %4687 = vmatprep.mubr.bf16.mxu1 %v2943_v47 }
 0x19d   : > { %4685 = vmatprep.subr.bf16.mxu1 %v5044_v38 }
 0x19e   : > { %4718 = vmatpush3.bf16.msra.mxu0 %v5052_v8  ;;  %v3563_v8 = vsel %vm498_vm0, %v5055_v48, 0 }
 0x19f   : > { %4735 = vmatprep.subr.bf16.mxu0 %v5053_v61 }
 0x1a0   : > { %4686 = vmatpush3.bf16.msra.mxu1 %v5044_v38 }
 0x1a3   : > { %4688 = vmatmul.mubr.bf16.vlgmr.msra.gmra.mrb[0].mxu1 %v2945_v52 }
 0x1a4   : > { %4691 = vmatprep.mubr.bf16.mxu1 %v2947_v37 }
 0x1ab   : > { %4692 = vmatmul.mubr.bf16.gmra.mrb[4].mxu1 %v2949_v56 }
 0x1ac   : > { %4695 = vmatprep.mubr.bf16.mxu1 %v2951_v57 }
 0x1b3   : > { %4696 = vmatmul.mubr.bf16.gmra.mrb[8].mxu1 %v2953_v58 }
 0x1b4   : > { %4699 = vmatprep.mubr.bf16.mxu1 %v2955_v59 }
 0x1bb   : > { %4700 = vmatmul.mubr.bf16.gmra.mrb[12].mxu1 %v2957_v62 }
 0x21c   : > { %v4497_v43 = vpop.f32.mrb[20].mxu0 }
 0x21d   : > { %v1522_v1 = vpop.f32.mrb[21].mxu0 }
 0x21e   : > { %v4498_v10 = vpop.f32.mrb[22].mxu0 }
 0x21f   : > { %v1525_v54 = vpop.f32.mrb[23].mxu0 }
 0x224   : > { %v4501_v11 = vpop.f32.mrb[24].mxu0 }
 0x225   : > { %v1538_v19 = vpop.f32.mrb[25].mxu0 }
 0x226   : > { %v4502_v12 = vpop.f32.mrb[26].mxu0 }
 0x227   : > { %v1541_v6 = vpop.f32.mrb[27].mxu0 }
 0x22c   : > { %v4505_v21 = vpop.f32.mrb[28].mxu0 }
 0x22d   : > { %v1554_v13 = vpop.f32.mrb[29].mxu0 }
 0x22e   : > { %v4506_v63 = vpop.f32.mrb[30].mxu0 }
 0x22f   : > { %v1557_v14 = vpop.f32.mrb[31].mxu0 }
 0x234   : > { %v5750_v17 = vpop.f32.mrb[32].mxu0 }
 0x235   : > { %v5752_v34 = vpop.f32.mrb[33].mxu0 }
 0x236   : > { %v5754_v36 = vpop.f32.mrb[34].mxu0 }
 0x237   : > { %v5756_v5 = vpop.f32.mrb[35].mxu0 }
 0x276   : > { %v4689_v9 = vpop.f32.mrb[0].mxu1 }
 0x277   : > { %v4757_v18 = vadd.f32 %v4689_v9, %v4497_v43  ;;  %v3048_v16 = vpop.f32.mrb[1].mxu1 }
 0x278   : > { %v4758_v32 = vadd.f32 %v3048_v16, %v1522_v1  ;;  %v4690_v22 = vpop.f32.mrb[2].mxu1 }
 0x279   : > { %v4759_v23 = vadd.f32 %v4690_v22, %v4498_v10  ;;  %v3051_v24 = vpop.f32.mrb[3].mxu1  ;;  %v5767_v28 = vadd.f32 %v4757_v18, %v5761_v20 }
 0x27a   : > { %v5764_v25 = vadd.f32 %v4758_v32, %v5761_v20  ;;  %v4760_v26 = vadd.f32 %v3051_v24, %v1525_v54 }
 0x27b   : > { %v5770_v29 = vadd.f32 %v4759_v23, %v5761_v20  ;;  %v3152_v31 = vmul.f32 %v5767_v28, %v5767_v28 }
 0x27c   : > { %v5773_v30 = vadd.f32 %v4760_v26, %v5761_v20  ;;  %v3150_v39 = vmul.f32 %v5764_v25, %v5764_v25 }
 0x27d   : > { %v3153_v35 = vmul.f32 %v5770_v29, %v5770_v29 }
 0x27e   : > { %v3151_v42 = vmul.f32 %v5773_v30, %v5773_v30  ;;  %v4693_v27 = vpop.f32.mrb[4].mxu1 }
 0x27f   : > { %v4761_v44 = vadd.f32 %v4693_v27, %v4501_v11  ;;  %v3064_v45 = vpop.f32.mrb[5].mxu1  ;;  %v3167_v38 = vpack.c.bf16 %v3153_v35, %v3152_v31 }
 0x280   : > { %v4762_v2 = vadd.f32 %v3064_v45, %v1538_v19  ;;  %v4694_v46 = vpop.f32.mrb[6].mxu1  ;;  %v3166_v49 = vpack.c.bf16 %v3151_v42, %v3150_v39 }
 0x281   : > { %v4763_v47 = vadd.f32 %v4694_v46, %v4502_v12  ;;  %v3067_v50 = vpop.f32.mrb[7].mxu1  ;;  %v5790_v53 = vadd.f32 %v4761_v44, %v5761_v20  ;;  %v5057_v12 = vld [vmem:[%s5209_s24 + $0x10] sm:$0xff]   ;;  %v5058_v44 = vld [vmem:[%s5209_s24 + $0x18] sm:$0xff]  }
 0x282   : > { %v5787_v52 = vadd.f32 %v4762_v2, %v5761_v20  ;;  %v4764_v37 = vadd.f32 %v3067_v50, %v1541_v6  ;;  %4719 = vmatprep.mubr.bf16.mxu0 %v3166_v49  ;;  %v3463_v42 = vshll.u32 %v5057_v12, 16  ;;  %v5059_v49 = vld [vmem:[%s5209_s24 + $0x20] sm:$0xff]   ;;  %v3471_v50 = vshll.u32 %v5058_v44, 16 }
 0x283   : > { %v5793_v55 = vadd.f32 %v4763_v47, %v5761_v20  ;;  %4720 = vmatmul.mubr.bf16.vlgmr.msra.gmra.mrb[36].mxu0 %v3167_v38  ;;  %v3156_v40 = vmul.f32 %v5790_v53, %v5790_v53 }
 0x284   : > { %v5796_v56 = vadd.f32 %v4764_v37, %v5761_v20  ;;  %4736 = vmatpush3.bf16.msra.mxu0 %v5053_v61  ;;  %v3154_v15 = vmul.f32 %v5787_v52, %v5787_v52  ;;  %v5056_v61 = vld [vmem:[%s5209_s24 + $0x8] sm:$0xff]   ;;  %v3465_v46 = vrot.slane %v3463_v42, 1 }
 0x285   : > { %v3157_v57 = vmul.f32 %v5793_v55, %v5793_v55  ;;  %4737 = vmatprep.subr.bf16.mxu0 %v5054_v51  ;;  %v3458_v6 = vshll.u32 %v5056_v61, 16  ;;  %v3456_v23 = vshrl.u32 %v5056_v61, 16 }
 0x286   : > { %v3155_v58 = vmul.f32 %v5796_v56, %v5796_v56  ;;  %v4697_v59 = vpop.f32.mrb[8].mxu1 }
 0x287   : > { %v4765_v60 = vadd.f32 %v4697_v59, %v4505_v21  ;;  %v3080_v41 = vpop.f32.mrb[9].mxu1  ;;  %v3169_v33 = vpack.c.bf16 %v3157_v57, %v3156_v40  ;;  %v3460_v39 = vrot.slane %v3458_v6, 1  ;;  %v5060_v59 = vld [vmem:[%s5209_s24 + $0x28] sm:$0xff]  }
 0x288   : > { %v4766_v62 = vadd.f32 %v3080_v41, %v1554_v13  ;;  %v4698_v0 = vpop.f32.mrb[10].mxu1  ;;  %v3168_v3 = vpack.c.bf16 %v3155_v58, %v3154_v15  ;;  %4738 = vmatpush3.bf16.msra.mxu0 %v5054_v51  ;;  %v3467_v51 = vshrl.u32 %v5057_v12, 16  ;;  %v3479_v15 = vshll.u32 %v5059_v49, 16 }
 0x289   : > { %v4767_v4 = vadd.f32 %v4698_v0, %v4506_v63  ;;  %v3083_v7 = vpop.f32.mrb[11].mxu1  ;;  %4886 = vmatprep.subr.msk.bf16.mxu0 %vm498_vm0, %v5055_v48  ;;  %v5816_v10 = vadd.f32 %v4765_v60, %v5761_v20  ;;  %v3461_v2 = vor.u32 %v3460_v39, %v3456_v23  ;;  %v3475_v48 = vshrl.u32 %v5058_v44, 16  ;;  %v5064_v23 = vld [vmem:[%s5209_s24 + $0x48] ss:$0 sps:$4 sm:$0x11]  }
 0x28a   : > { %v5813_v43 = vadd.f32 %v4766_v62, %v5761_v20  ;;  %v4768_v1 = vadd.f32 %v3083_v7, %v1557_v14  ;;  %4723 = vmatprep.mubr.bf16.mxu0 %v3168_v3  ;;  %v3473_v58 = vrot.slane %v3471_v50, 1  ;;  %v3469_v40 = vor.u32 %v3467_v51, %v3465_v46  ;;  %v5061_v62 = vld [vmem:[%s5209_s24 + $0x30] sm:$0xff]  }
 0x28b   : > { %v5819_v54 = vadd.f32 %v4767_v4, %v5761_v20  ;;  %4724 = vmatmul.mubr.bf16.gmra.mrb[40].mxu0 %v3169_v33  ;;  %v3160_v14 = vmul.f32 %v5816_v10, %v5816_v10  ;;  %v3466_v57 = vsel %vm1018_vm14, %v3461_v2, %v3465_v46  ;;  %v3481_v41 = vrot.slane %v3479_v15, 1 }
 0x28c   : > { %v5822_v11 = vadd.f32 %v4768_v1, %v5761_v20  ;;  %4740 = vmatpush3.bf16.msra.mxu0 %v3563_v8  ;;  %v3158_v21 = vmul.f32 %v5813_v43, %v5813_v43  ;;  %v3477_v60 = vor.u32 %v3475_v48, %v3473_v58  ;;  %v3487_v0 = vshll.u32 %v5060_v59, 16  ;;  %v5062_v1 = vld [vmem:[%s5209_s24 + $0x38] sm:$0xff]  }
 0x28d   : > { %v3161_v19 = vmul.f32 %v5819_v54, %v5819_v54  ;;  %v3474_v3 = vsel %vm1018_vm14, %v3469_v40, %v3473_v58  ;;  %v3483_v4 = vshrl.u32 %v5059_v49, 16  ;;  %v3491_v33 = vshrl.u32 %v5060_v59, 16 }
 0x28e   : > { %v3159_v13 = vmul.f32 %v5822_v11, %v5822_v11  ;;  %v4701_v63 = vpop.f32.mrb[12].mxu1  ;;  %v3482_v7 = vsel %vm1018_vm14, %v3477_v60, %v3481_v41  ;;  %v3495_v8 = vshll.u32 %v5061_v62, 16  ;;  %v3489_v61 = vrot.slane %v3487_v0, 1 }
 0x28f   : > { %v4769_v9 = vadd.f32 %v4701_v63, %v5750_v17  ;;  %v3096_v18 = vpop.f32.mrb[13].mxu1  ;;  %v3171_v35 = vpack.c.bf16 %v3161_v19, %v3160_v14  ;;  %v3485_v19 = vor.u32 %v3483_v4, %v3481_v41  ;;  %v3499_v14 = vshrl.u32 %v5061_v62, 16 }
 0x290   : > { %v4770_v16 = vadd.f32 %v3096_v18, %v5752_v34  ;;  %v4702_v32 = vpop.f32.mrb[14].mxu1  ;;  %v3170_v22 = vpack.c.bf16 %v3159_v13, %v3158_v21  ;;  %v3493_v12 = vor.u32 %v3491_v33, %v3489_v61  ;;  %v3497_v6 = vrot.slane %v3495_v8, 1  ;;  %v5063_v21 = vld [vmem:[%s5209_s24 + $0x40] sm:$0xff]  }
 0x291   : > { %v4771_v24 = vadd.f32 %v4702_v32, %v5754_v36  ;;  %v3099_v26 = vpop.f32.mrb[15].mxu1  ;;  %v5841_v17 = vadd.f32 %v4769_v9, %v5761_v20  ;;  %v3503_v13 = vshll.u32 %v5062_v1, 16  ;;  %v3490_v63 = vsel %vm1018_vm14, %v3485_v19, %v3489_v61 }
 0x292   : > { %v5837_v27 = vadd.f32 %v4770_v16, %v5761_v20  ;;  %v4772_v31 = vadd.f32 %v3099_v26, %v5756_v5  ;;  %4727 = vmatprep.mubr.bf16.mxu0 %v3170_v22  ;;  %v3498_v9 = vsel %vm1018_vm14, %v3493_v12, %v3497_v6  ;;  %v3507_v18 = vshrl.u32 %v5062_v1, 16 }
 0x293   : > { %v5844_v34 = vadd.f32 %v4771_v24, %v5761_v20  ;;  %4728 = vmatmul.mubr.bf16.gmra.mrb[44].mxu0 %v3171_v35  ;;  %v3164_v47 = vmul.f32 %v5841_v17, %v5841_v17  ;;  %v3511_v16 = vshll.u32 %v5063_v21, 16  ;;  %v3505_v32 = vrot.slane %v3503_v13, 1 }
 0x294   : > { %v5848_v36 = vadd.f32 %v4772_v31, %v5761_v20  ;;  %v3162_v5 = vmul.f32 %v5837_v27, %v5837_v27  ;;  %v3501_v22 = vor.u32 %v3499_v14, %v3497_v6  ;;  %v3515_v39 = vshrl.u32 %v5063_v21, 16 }
 0x295   : > { %v3165_v45 = vmul.f32 %v5844_v34, %v5844_v34  ;;  %v3509_v24 = vor.u32 %v3507_v18, %v3505_v32  ;;  %v3513_v26 = vrot.slane %v3511_v16, 1  ;;  %v3519_v42 = vshll.u32 %v5064_v23, 16 }
 0x296   : > { %v3163_v38 = vmul.f32 %v5848_v36, %v5848_v36  ;;  %v3506_v35 = vsel %vm1018_vm14, %v3501_v22, %v3505_v32 }
 0x297   : > { %v3173_v37 = vpack.c.bf16 %v3165_v45, %v3164_v47  ;;  %v3514_v31 = vsel %vm1018_vm14, %v3509_v24, %v3513_v26  ;;  %v3517_v44 = vor.u32 %v3515_v39, %v3513_v26  ;;  %v3521_v45 = vrot.slane %v3519_v42, 1  ;;  %v5883_v47 = vld [vmem:[%s5975_s6] ss:$0 sm:$0xff] }
 0x298   : > { %v3172_v20 = vpack.c.bf16 %v3163_v38, %v3162_v5 }
 0x299   : > { %v3522_v2 = vsel %vm1018_vm14, %v3517_v44, %v3521_v45  ;;  %v5902_v45 = vld [vmem:[%s5977_s8] ss:$0 sm:$0xff] }
 0x29a   : > { %4731 = vmatprep.mubr.bf16.mxu0 %v3172_v20 }
 0x29b   : > { %4732 = vmatmul.mubr.bf16.gmra.mrb[48].mxu0 %v3173_v37 }
 0x29c   : > { %4741 = vmatprep.mubr.msk.bf16.mxu0 %vm467_vm1, %v3466_v57 }
 0x2a3   : > { %4742 = vmatmul.mubr.msk.bf16.vlgmr.msra.gmra.mrb[52].mxu0 %vm467_vm1, %v3474_v3 }
 0x2a4   : > { %4745 = vmatprep.mubr.msk.bf16.mxu0 %vm467_vm1, %v3482_v7 }
 0x2ab   : > { %4746 = vmatmul.mubr.msk.bf16.gmra.mrb[56].mxu0 %vm467_vm1, %v3490_v63 }
 0x2ac   : > { %4749 = vmatprep.mubr.msk.bf16.mxu0 %vm467_vm1, %v3498_v9 }
 0x2b3   : > { %4750 = vmatmul.mubr.msk.bf16.gmra.mrb[60].mxu0 %vm467_vm1, %v3506_v35 }
 0x2b4   : > { %4753 = vmatprep.mubr.msk.bf16.mxu0 %vm467_vm1, %v3514_v31 }
 0x2bb   : > { %4754 = vmatmul.mubr.msk.bf16.gmra.mrb[64].mxu0 %vm467_vm1, %v3522_v2 }
 0x356   : > { %v4721_v46 = vpop.f32.mrb[36].mxu0 }
 0x357   : > { %v3279_v49 = vpop.f32.mrb[37].mxu0  ;;  %v3288_v51 = vadd.f32 %v4721_v46, %v5883_v47 }
 0x358   : > { %v4722_v5 = vpop.f32.mrb[38].mxu0  ;;  %v3280_v57 = vadd.f32 %v5883_v47, %v3279_v49 }
 0x359   : > { %v3282_v38 = vpop.f32.mrb[39].mxu0  ;;  %v3291_v15 = vadd.f32 %v4722_v5, %v5883_v47  ;;  %v3344_v59 = vmax.f32 %v3288_v51, 1e-06 }
 0x35a   : > { %v3283_v58 = vadd.f32 %v5883_v47, %v3282_v38  ;;  %v3342_v40 = vmax.f32 %v3280_v57, 1e-06 }
 0x35b   : > { %v3345_v60 = vmax.f32 %v3291_v15, 1e-06  ;;  %5065 = vrsqrt.f32 %v3344_v59 }
 0x35c   : > { %v3343_v62 = vmax.f32 %v3283_v58, 1e-06  ;;  %5067 = vrsqrt.f32 %v3342_v40 }
 0x35d   : > { %5069 = vrsqrt.f32 %v3345_v60 }
 0x35e   : > { %v4725_v50 = vpop.f32.mrb[40].mxu0  ;;  %5071 = vrsqrt.f32 %v3343_v62 }
 0x35f   : > { %v3295_v20 = vpop.f32.mrb[41].mxu0  ;;  %v3304_v3 = vadd.f32 %v4725_v50, %v5883_v47 }
 0x360   : > { %v4726_v37 = vpop.f32.mrb[42].mxu0  ;;  %v3296_v7 = vadd.f32 %v5883_v47, %v3295_v20 }
 0x361   : > { %v3298_v48 = vpop.f32.mrb[43].mxu0  ;;  %v3307_v8 = vadd.f32 %v4726_v37, %v5883_v47  ;;  %v3348_v1 = vmax.f32 %v3304_v3, 1e-06 }
 0x362   : > { %v3299_v61 = vadd.f32 %v5883_v47, %v3298_v48  ;;  %v3346_v19 = vmax.f32 %v3296_v7, 1e-06 }
 0x363   : > { %v3349_v12 = vmax.f32 %v3307_v8, 1e-06  ;;  %5073 = vrsqrt.f32 %v3348_v1 }
 0x364   : > { %v3347_v21 = vmax.f32 %v3299_v61, 1e-06  ;;  %5075 = vrsqrt.f32 %v3346_v19 }
 0x365   : > { %v5066_v16 = vpop.eup %5065  ;;  %5077 = vrsqrt.f32 %v3349_v12 }
 0x366   : > { %v4729_v41 = vpop.f32.mrb[44].mxu0  ;;  %v5068_v22 = vpop.eup %5067  ;;  %5079 = vrsqrt.f32 %v3347_v21  ;;  %v3376_v42 = vmul.f32 %v5066_v16, %v5767_v28 }
 0x367   : > { %v3311_v0 = vpop.f32.mrb[45].mxu0  ;;  %v3320_v63 = vadd.f32 %v4729_v41, %v5883_v47  ;;  %v5070_v24 = vpop.eup %5069  ;;  %v3374_v2 = vmul.f32 %v5068_v22, %v5764_v25 }
 0x368   : > { %v4730_v4 = vpop.f32.mrb[46].mxu0  ;;  %v3312_v9 = vadd.f32 %v5883_v47, %v3311_v0  ;;  %v5072_v35 = vpop.eup %5071  ;;  %v3377_v38 = vmul.f32 %v5070_v24, %v5770_v29 }
 0x369   : > { %v3314_v33 = vpop.f32.mrb[47].mxu0  ;;  %v3323_v32 = vadd.f32 %v4730_v4, %v5883_v47  ;;  %v3352_v26 = vmax.f32 %v3320_v63, 1e-06  ;;  %v3375_v51 = vmul.f32 %v5072_v35, %v5773_v30 }
 0x36a   : > { %v3315_v23 = vadd.f32 %v5883_v47, %v3314_v33  ;;  %v3350_v39 = vmax.f32 %v3312_v9, 1e-06 }
 0x36b   : > { %v3353_v31 = vmax.f32 %v3323_v32, 1e-06  ;;  %5081 = vrsqrt.f32 %v3352_v26 }
 0x36c   : > { %v3351_v46 = vmax.f32 %v3315_v23, 1e-06  ;;  %5083 = vrsqrt.f32 %v3350_v39 }
 0x36d   : > { %v5074_v48 = vpop.eup %5073  ;;  %5085 = vrsqrt.f32 %v3353_v31 }
 0x36e   : > { %v4733_v6 = vpop.f32.mrb[48].mxu0  ;;  %v5076_v40 = vpop.eup %5075  ;;  %5087 = vrsqrt.f32 %v3351_v46  ;;  %v3380_v7 = vmul.f32 %v5074_v48, %v5790_v53 }
 0x36f   : > { %v3327_v13 = vpop.f32.mrb[49].mxu0  ;;  %v3336_v50 = vadd.f32 %v4733_v6, %v5883_v47  ;;  %v5078_v41 = vpop.eup %5077  ;;  %v3378_v61 = vmul.f32 %v5076_v40, %v5787_v52 }
 0x370   : > { %v4734_v14 = vpop.f32.mrb[50].mxu0  ;;  %v3328_v25 = vadd.f32 %v5883_v47, %v3327_v13  ;;  %v5080_v3 = vpop.eup %5079  ;;  %v3381_v12 = vmul.f32 %v5078_v41, %v5793_v55 }
 0x371   : > { %v3330_v18 = vpop.f32.mrb[51].mxu0  ;;  %v3339_v15 = vadd.f32 %v4734_v14, %v5883_v47  ;;  %v3356_v62 = vmax.f32 %v3336_v50, 1e-06  ;;  %v3379_v13 = vmul.f32 %v5080_v3, %v5796_v56 }
 0x372   : > { %v3331_v30 = vadd.f32 %v5883_v47, %v3330_v18  ;;  %v3354_v4 = vmax.f32 %v3328_v25, 1e-06 }
 0x373   : > { %v3357_v33 = vmax.f32 %v3339_v15, 1e-06  ;;  %5089 = vrsqrt.f32 %v3356_v62 }
 0x374   : > { %v3355_v1 = vmax.f32 %v3331_v30, 1e-06  ;;  %5091 = vrsqrt.f32 %v3354_v4 }
 0x375   : > { %v5082_v52 = vpop.eup %5081  ;;  %5093 = vrsqrt.f32 %v3357_v33 }
 0x376   : > { %v4743_v44 = vpop.f32.mrb[52].mxu0  ;;  %v5084_v16 = vpop.eup %5083  ;;  %5095 = vrsqrt.f32 %v3355_v1  ;;  %v3384_v23 = vmul.f32 %v5082_v52, %v5816_v10 }
 0x377   : > { %v3664_v49 = vadd.f32 %v4743_v44, %v3376_v42  ;;  %v3599_v5 = vpop.f32.mrb[53].mxu0  ;;  %v5086_v32 = vpop.eup %5085  ;;  %v3382_v26 = vmul.f32 %v5084_v16, %v5813_v43 }
 0x378   : > { %v3662_v28 = vadd.f32 %v3599_v5, %v3374_v2  ;;  %v4744_v20 = vpop.f32.mrb[54].mxu0  ;;  %v5088_v22 = vpop.eup %5087  ;;  %v3385_v42 = vmul.f32 %v5086_v32, %v5819_v54 }
 0x379   : > { %v3687_v37 = vadd.f32 %v5902_v45, %v3664_v49  ;;  %v3665_v29 = vadd.f32 %v4744_v20, %v3377_v38  ;;  %v3602_v57 = vpop.f32.mrb[55].mxu0  ;;  %v3383_v2 = vmul.f32 %v5088_v22, %v5822_v11 }
 0x37a   : > { %v3685_v58 = vadd.f32 %v5902_v45, %v3662_v28  ;;  %v3663_v59 = vadd.f32 %v3602_v57, %v3375_v51 }
 0x37b   : > { %3703 = vst [vmem:[%s5910_s21 + $0x10] sm:$0xff] %v3687_v37  ;;  %v3688_v60 = vadd.f32 %v5902_v45, %v3665_v29 }
 0x37c   : > { %3701 = vst [vmem:[%s5910_s21] sm:$0xff] %v3685_v58  ;;  %v3686_v0 = vadd.f32 %v5902_v45, %v3663_v59 }
 0x37d   : > { %3704 = vst [vmem:[%s5910_s21 + $0x18] sm:$0xff] %v3688_v60  ;;  %v5090_v5 = vpop.eup %5089 }
 0x37e   : > { %3702 = vst [vmem:[%s5910_s21 + $0x8] sm:$0xff] %v3686_v0  ;;  %v4747_v8 = vpop.f32.mrb[56].mxu0  ;;  %v5092_v43 = vpop.eup %5091  ;;  %v3388_v11 = vmul.f32 %v5090_v5, %v5841_v17 }
 0x37f   : > { %v3668_v47 = vadd.f32 %v4747_v8, %v3380_v7  ;;  %v3615_v19 = vpop.f32.mrb[57].mxu0  ;;  %v5094_v20 = vpop.eup %5093  ;;  %v3386_v37 = vmul.f32 %v5092_v43, %v5837_v27 }
 0x380   : > { %v3666_v6 = vadd.f32 %v3615_v19, %v3378_v61  ;;  %v4748_v21 = vpop.f32.mrb[58].mxu0  ;;  %v5096_v51 = vpop.eup %5095  ;;  %v3389_v48 = vmul.f32 %v5094_v20, %v5844_v34 }
 0x381   : > { %v3691_v53 = vadd.f32 %v5902_v45, %v3668_v47  ;;  %v3669_v63 = vadd.f32 %v4748_v21, %v3381_v12  ;;  %v3618_v14 = vpop.f32.mrb[59].mxu0  ;;  %v3387_v59 = vmul.f32 %v5096_v51, %v5848_v36 }
 0x382   : > { %v3689_v9 = vadd.f32 %v5902_v45, %v3666_v6  ;;  %v3667_v18 = vadd.f32 %v3618_v14, %v3379_v13 }
 0x383   : > { %3707 = vst [vmem:[%s5910_s21 + $0x30] sm:$0xff] %v3691_v53  ;;  %v3692_v55 = vadd.f32 %v5902_v45, %v3669_v63 }
 0x384   : > { %3705 = vst [vmem:[%s5910_s21 + $0x20] sm:$0xff] %v3689_v9  ;;  %v3690_v56 = vadd.f32 %v5902_v45, %v3667_v18 }
 0x385   : > { %3708 = vst [vmem:[%s5910_s21 + $0x38] sm:$0xff] %v3692_v55 }
 0x386   : > { %3706 = vst [vmem:[%s5910_s21 + $0x28] sm:$0xff] %v3690_v56  ;;  %v4751_v24 = vpop.f32.mrb[60].mxu0 }
 0x387   : > { %v3672_v35 = vadd.f32 %v4751_v24, %v3384_v23  ;;  %v3631_v39 = vpop.f32.mrb[61].mxu0 }
 0x388   : > { %v3670_v31 = vadd.f32 %v3631_v39, %v3382_v26  ;;  %v4752_v44 = vpop.f32.mrb[62].mxu0 }
 0x389   : > { %v3695_v46 = vadd.f32 %v5902_v45, %v3672_v35  ;;  %v3673_v49 = vadd.f32 %v4752_v44, %v3385_v42  ;;  %v3634_v10 = vpop.f32.mrb[63].mxu0 }
 0x38a   : > { %v3693_v38 = vadd.f32 %v5902_v45, %v3670_v31  ;;  %v3671_v50 = vadd.f32 %v3634_v10, %v3383_v2 }
 0x38b   : > { %3711 = vst [vmem:[%s5910_s21 + $0x50] sm:$0xff] %v3695_v46  ;;  %v3696_v28 = vadd.f32 %v5902_v45, %v3673_v49 }
 0x38c   : > { %3709 = vst [vmem:[%s5910_s21 + $0x40] sm:$0xff] %v3693_v38  ;;  %v3694_v54 = vadd.f32 %v5902_v45, %v3671_v50 }
 0x38d   : > { %3712 = vst [vmem:[%s5910_s21 + $0x58] sm:$0xff] %v3696_v28 }
 0x38e   : > { %3710 = vst [vmem:[%s5910_s21 + $0x48] sm:$0xff] %v3694_v54  ;;  %v4755_v25 = vpop.f32.mrb[64].mxu0 }
 0x38f   : > { %v3676_v29 = vadd.f32 %v4755_v25, %v3388_v11  ;;  %v3647_v57 = vpop.f32.mrb[65].mxu0 }
 0x390   : > { %v3674_v15 = vadd.f32 %v3647_v57, %v3386_v37  ;;  %v4756_v58 = vpop.f32.mrb[66].mxu0 }
 0x391   : > { %v3699_v40 = vadd.f32 %v5902_v45, %v3676_v29  ;;  %v3677_v30 = vadd.f32 %v4756_v58, %v3389_v48  ;;  %v3650_v60 = vpop.f32.mrb[67].mxu0 }
 0x392   : > { %v3697_v17 = vadd.f32 %v5902_v45, %v3674_v15  ;;  %v3675_v41 = vadd.f32 %v3650_v60, %v3387_v59 }
 0x393   : > { %3715 = vst [vmem:[%s5910_s21 + $0x70] sm:$0xff] %v3699_v40  ;;  %v3700_v27 = vadd.f32 %v5902_v45, %v3677_v30 }
 0x394   : > { %3713 = vst [vmem:[%s5910_s21 + $0x60] sm:$0xff] %v3697_v17  ;;  %v3698_v62 = vadd.f32 %v5902_v45, %v3675_v41 }
 0x395   : > { %3716 = vst [vmem:[%s5910_s21 + $0x78] sm:$0xff] %v3700_v27 }
 0x396   : > { %3714 = vst [vmem:[%s5910_s21 + $0x68] sm:$0xff] %v3698_v62 }
 0x397 PF: > { %s19_s11 = sadd.s32 1, %s5119_s11   ;;  %s5979_s30 = smov %s5115_s10 }
 0x398   : > { %p16_p5 = scmp.ge.s32.totalorder %s19_s11, 4   ;;  %s5980_s10 = smov %s5982_s12 }
 0x39a   :  { %18 = sbr.rel (!%p16_p5) target bundleno = 2 (0x2), region = 94 }

</bundles_post_ra>
